<compile_context>
chip_gen: v6e
topology: v6e:2x2x1
jax: 0.10.0
libtpu: 0.0.40
codegen_flags: <defaults>
</compile_context>

<pallas_src>
import functools

import jax
import jax.numpy as jnp
from jax.experimental import pallas as pl
from jax.experimental.pallas import tpu as pltpu


def _residual_block_kernel(x_ref, w1_ref, w2_ref, out_ref, pad_ref,
                           *, Nb, H, W, C, Cout):
    """One grid step = Nb batch images.

    x_ref  : (Nb, H, W*C)        bf16 flattened-NHWC input (also the residual)
    w*_ref : (3, W*Cin, W*Cout)  bf16 dx-folded per-ky conv weights
    out_ref: (Nb, H, W*Cout)     f32 flattened-NHWC output
    pad_ref: (Nb*(H+2), W*C)     scratch: per-image [zero row | H rows | zero row]
    """
    f32 = jnp.float32
    Hp = H + 2
    M = Nb * Hp - 2                 # matmul M; trailing 2 rows never needed

    zrow = jnp.zeros((1, W * C), pad_ref.dtype)
    for b in range(Nb):
        base = b * Hp
        # Zero only the 2 halo rows per image (full-width, lane-0-aligned);
        # the interior is fully overwritten below.
        pad_ref[base:base + 1, :] = zrow
        pad_ref[base + H + 1:base + H + 2, :] = zrow
        pad_ref[base + 1:base + 1 + H, :] = x_ref[b]          # interior = image b

    def conv3x3(w_ref):
        # 3 row-shifted full-width matmuls (ky = 0,1,2); dx taps and the
        # horizontal zero padding are folded into w_ref. bf16 x bf16 -> f32.
        acc = jnp.zeros((M, W * Cout), f32)
        for ky in range(3):
            acc = acc + jnp.dot(pad_ref[ky:ky + M, :], w_ref[ky],
                                preferred_element_type=f32)
        return acc

    # conv1 + relu, then write each image's block back into the scratch
    # interior (halo rows stay zero) as the input of conv2.  Cout == C here.
    out1 = jnp.maximum(conv3x3(w1_ref), 0.0)
    for b in range(Nb):
        base = b * Hp
        pad_ref[base + 1:base + 1 + H, :] = (
            out1[base:base + H, :].astype(pad_ref.dtype))

    # conv2 + residual + relu.  Residual is re-read per image (not held live
    # across both convs) to keep register pressure low at large M.
    out2 = conv3x3(w2_ref)
    for b in range(Nb):
        base = b * Hp
        res = x_ref[b].astype(f32)
        y = jnp.maximum(out2[base:base + H, :] + res, 0.0)
        out_ref[b] = y.astype(out_ref.dtype)


def _fold_dx_taps(w_oihw, W):
    """OIHW (Cout,Cin,3,3) -> (3, W*Cin, W*Cout) dx-folded per-ky weights.

    wf[ky, jx*Cin + c, j*Cout + o] = w[o, c, ky, kx] for jx = j + kx - 1 in [0, W);
    out-of-range dx taps (the zero left/right padding) are simply dropped.
    """
    w = jnp.transpose(w_oihw, (2, 3, 1, 0))                    # HWIO (3,3,Cin,Cout)
    Cin, Cout = w.shape[2], w.shape[3]
    kx = jnp.arange(3)[:, None, None]
    jx = jnp.arange(W)[None, :, None]
    j = jnp.arange(W)[None, None, :]
    shift = (jx == j + kx - 1).astype(w.dtype)                 # (3, W, W)
    wf = jnp.einsum('xpj,yxco->ypcjo', shift, w)               # (3, W, Cin, W, Cout)
    return wf.reshape(3, W * Cin, W * Cout)


def _pick_nb(N, H, target_m=256):
    """Images per grid step: fill the MXU M dim (~target_m rows) but keep at
    least 2 grid steps when N allows so both v7x TensorCores get work."""
    nb = max(1, min(N, -(-target_m // (H + 2))))
    while nb > 1 and (N % nb != 0 or N // nb < 2):
        nb -= 1
    return nb


def residual_block(x_nchw, w1_oihw, w2_oihw, *, compute_dtype=jnp.bfloat16):
    """x: (N,C,H,W) f32; w*: (Cout,Cin,3,3) f32. Returns (N,Cout,H,W) f32."""
    N, C, H, W = x_nchw.shape
    Cout1, Cin1 = w1_oihw.shape[0], w1_oihw.shape[1]
    Cout2, Cin2 = w2_oihw.shape[0], w2_oihw.shape[1]
    assert Cin1 == C and Cout1 == C, \
        "residual path (downsample=None) requires Cin == Cout for conv1"
    assert Cin2 == Cout1 and Cout2 == Cout1, "conv2 must map Cout -> Cout"
    Cout = Cout2

    Nb = _pick_nb(N, H)
    grid = (N // Nb,)

    # Flattened NHWC: (N, H, W*C); the reshape is layout-free since NHWC is
    # contiguous in (W, C). Cast matmul inputs to bf16 (f32 accumulation).
    x = jnp.transpose(x_nchw, (0, 2, 3, 1)).reshape(N, H, W * C)
    x = x.astype(compute_dtype)
    wf1 = _fold_dx_taps(w1_oihw, W).astype(compute_dtype)      # (3, W*C,    W*Cout)
    wf2 = _fold_dx_taps(w2_oihw, W).astype(compute_dtype)      # (3, W*Cout, W*Cout)

    kernel = functools.partial(_residual_block_kernel,
                               Nb=Nb, H=H, W=W, C=C, Cout=Cout)

    # TODO(synk): at ResNet scale drop the per-W folded weights (they grow as
    # 9*(W*C)*(W*Cout)) for dense per-tap (Cin,Cout) weights with C on the lane
    # axis and an H-row grid axis with a 2-row halo (bounds VMEM on v7x).
    # TODO(synk): when W*Cout < 128 (toy shapes only) the output stores are
    # masked; pairing two images side-by-side in lanes would make them dense.
    out = pl.pallas_call(
        kernel,
        out_shape=jax.ShapeDtypeStruct((N, H, W * Cout), jnp.float32),
        grid_spec=pltpu.PrefetchScalarGridSpec(
            num_scalar_prefetch=0,
            grid=grid,                                   # Nb images per step
            in_specs=[
                pl.BlockSpec((Nb, H, W * C), lambda n: (n, 0, 0)),
                pl.BlockSpec((3, W * C, W * Cout), lambda n: (0, 0, 0)),
                pl.BlockSpec((3, W * Cout, W * Cout), lambda n: (0, 0, 0)),
            ],
            out_specs=pl.BlockSpec((Nb, H, W * Cout), lambda n: (n, 0, 0)),
            scratch_shapes=[
                pltpu.VMEM((Nb * (H + 2), W * C), compute_dtype)],
        ),
        compiler_params=pltpu.CompilerParams(
            dimension_semantics=("parallel",),
            vmem_limit_bytes=32 * 1024 * 1024),
    )(x, wf1, wf2)

    out = out.reshape(N, H, W, Cout)
    return jnp.transpose(out, (0, 3, 1, 2)).astype(x_nchw.dtype)   # back to NCHW


def _reference(x_nchw, w1_oihw, w2_oihw, compute_dtype=jnp.bfloat16):
    """Plain-JAX reference mirroring the kernel's bf16 matmul inputs / f32 accum."""
    f32 = jnp.float32

    def rnd(a):
        return a.astype(compute_dtype).astype(f32)

    dn = jax.lax.conv_dimension_numbers(x_nchw.shape, w1_oihw.shape,
                                        ("NCHW", "OIHW", "NCHW"))
    out = jax.lax.conv_general_dilated(rnd(x_nchw), rnd(w1_oihw), (1, 1), "SAME",
                                       dimension_numbers=dn)
    out = jnp.maximum(out, 0.0)
    out = jax.lax.conv_general_dilated(rnd(out), rnd(w2_oihw), (1, 1), "SAME",
                                       dimension_numbers=dn)
    out = out + rnd(x_nchw)
    return jnp.maximum(out, 0.0)


if __name__ == "__main__":
    # Small shapes consistent with the module (residual path needs Cin == Cout).
    # N=8 exercises both the multi-image-per-step stacking (Nb=4) and a
    # multi-step "parallel" batch grid.
    N, C, H, W = 8, 4, 16, 16
    key = jax.random.PRNGKey(0)
    kx, k1, k2 = jax.random.split(key, 3)

    x = jax.random.normal(kx, (N, C, H, W), dtype=jnp.float32)
    # Deterministic Kaiming-like init for the two 3x3 convs (OIHW, no bias).
    fan_in = C * 3 * 3
    std = (2.0 / fan_in) ** 0.5
    w1 = std * jax.random.normal(k1, (C, C, 3, 3), dtype=jnp.float32)
    w2 = std * jax.random.normal(k2, (C, C, 3, 3), dtype=jnp.float32)

    out = jax.block_until_ready(residual_block(x, w1, w2))
    ref = jax.block_until_ready(_reference(x, w1, w2))

    assert out.shape == (N, C, H, W)
    assert out.dtype == jnp.float32
    assert jnp.allclose(out, ref, atol=1e-3, rtol=1e-3), \
        float(jnp.max(jnp.abs(out - ref)))

    print("KERNEL_OK")
</pallas_src>

<mosaic_0001>
module attributes {stable_mosaic.version = 11 : i64} {
  func.func @_residual_block_kernel(%arg0: i32, %arg1: memref<4x16x64xbf16, #tpu.memory_space<vmem>>, %arg2: memref<3x64x64xbf16, #tpu.memory_space<vmem>>, %arg3: memref<3x64x64xbf16, #tpu.memory_space<vmem>>, %arg4: memref<4x16x64xf32, #tpu.memory_space<vmem>>, %arg5: memref<72x64xbf16, #tpu.memory_space<vmem>>) attributes {dimension_semantics = [#tpu.dimension_semantics<parallel>], iteration_bounds = array<i64: 2>, scalar_prefetch = 0 : i64, scratch_operands = 1 : i64, tpu.core_type = #tpu.core_type<tc>, window_params = [{transform_indices = @transform_0, window_bounds = array<i64: 4, 16, 64>}, {pipeline_mode = #tpu.pipeline_mode<synchronous>, transform_indices = @transform_1, window_bounds = array<i64: 3, 64, 64>}, {pipeline_mode = #tpu.pipeline_mode<synchronous>, transform_indices = @transform_2, window_bounds = array<i64: 3, 64, 64>}, {transform_indices = @transform_3, window_bounds = array<i64: 4, 16, 64>}]} {
    %cst = arith.constant 0.000000e+00 : bf16
    %0 = vector.broadcast %cst : bf16 to vector<1x64xbf16>
    %c0 = arith.constant 0 : index
    %c0_0 = arith.constant 0 : index
    %1 = vector.load %arg5[%c0, %c0_0] : memref<72x64xbf16, #tpu.memory_space<vmem>>, vector<1x64xbf16>
    tpu.vector_store %arg5[%c0, %c0_0], %0 {strides = array<i32>} : memref<72x64xbf16, #tpu.memory_space<vmem>>, vector<1x64xbf16>,
    %c17 = arith.constant 17 : index
    %c0_1 = arith.constant 0 : index
    %2 = vector.load %arg5[%c17, %c0_1] : memref<72x64xbf16, #tpu.memory_space<vmem>>, vector<1x64xbf16>
    tpu.vector_store %arg5[%c17, %c0_1], %0 {strides = array<i32>} : memref<72x64xbf16, #tpu.memory_space<vmem>>, vector<1x64xbf16>,
    %c0_2 = arith.constant 0 : index
    %c0_3 = arith.constant 0 : index
    %c0_4 = arith.constant 0 : index
    %3 = vector.load %arg1[%c0_2, %c0_3, %c0_4] : memref<4x16x64xbf16, #tpu.memory_space<vmem>>, vector<1x16x64xbf16>
    %4 = vector.shape_cast %3 : vector<1x16x64xbf16> to vector<16x64xbf16>
    %c1 = arith.constant 1 : index
    %c0_5 = arith.constant 0 : index
    %5 = vector.load %arg5[%c1, %c0_5] : memref<72x64xbf16, #tpu.memory_space<vmem>>, vector<16x64xbf16>
    tpu.vector_store %arg5[%c1, %c0_5], %4 {strides = array<i32>} : memref<72x64xbf16, #tpu.memory_space<vmem>>, vector<16x64xbf16>,
    %c18 = arith.constant 18 : index
    %c0_6 = arith.constant 0 : index
    %6 = vector.load %arg5[%c18, %c0_6] : memref<72x64xbf16, #tpu.memory_space<vmem>>, vector<1x64xbf16>
    tpu.vector_store %arg5[%c18, %c0_6], %0 {strides = array<i32>} : memref<72x64xbf16, #tpu.memory_space<vmem>>, vector<1x64xbf16>,
    %c35 = arith.constant 35 : index
    %c0_7 = arith.constant 0 : index
    %7 = vector.load %arg5[%c35, %c0_7] : memref<72x64xbf16, #tpu.memory_space<vmem>>, vector<1x64xbf16>
    tpu.vector_store %arg5[%c35, %c0_7], %0 {strides = array<i32>} : memref<72x64xbf16, #tpu.memory_space<vmem>>, vector<1x64xbf16>,
    %c1_8 = arith.constant 1 : index
    %c0_9 = arith.constant 0 : index
    %c0_10 = arith.constant 0 : index
    %8 = vector.load %arg1[%c1_8, %c0_9, %c0_10] : memref<4x16x64xbf16, #tpu.memory_space<vmem>>, vector<1x16x64xbf16>
    %9 = vector.shape_cast %8 : vector<1x16x64xbf16> to vector<16x64xbf16>
    %c19 = arith.constant 19 : index
    %c0_11 = arith.constant 0 : index
    %10 = vector.load %arg5[%c19, %c0_11] : memref<72x64xbf16, #tpu.memory_space<vmem>>, vector<16x64xbf16>
    tpu.vector_store %arg5[%c19, %c0_11], %9 {strides = array<i32>} : memref<72x64xbf16, #tpu.memory_space<vmem>>, vector<16x64xbf16>,
    %c36 = arith.constant 36 : index
    %c0_12 = arith.constant 0 : index
    %11 = vector.load %arg5[%c36, %c0_12] : memref<72x64xbf16, #tpu.memory_space<vmem>>, vector<1x64xbf16>
    tpu.vector_store %arg5[%c36, %c0_12], %0 {strides = array<i32>} : memref<72x64xbf16, #tpu.memory_space<vmem>>, vector<1x64xbf16>,
    %c53 = arith.constant 53 : index
    %c0_13 = arith.constant 0 : index
    %12 = vector.load %arg5[%c53, %c0_13] : memref<72x64xbf16, #tpu.memory_space<vmem>>, vector<1x64xbf16>
    tpu.vector_store %arg5[%c53, %c0_13], %0 {strides = array<i32>} : memref<72x64xbf16, #tpu.memory_space<vmem>>, vector<1x64xbf16>,
    %c2 = arith.constant 2 : index
    %c0_14 = arith.constant 0 : index
    %c0_15 = arith.constant 0 : index
    %13 = vector.load %arg1[%c2, %c0_14, %c0_15] : memref<4x16x64xbf16, #tpu.memory_space<vmem>>, vector<1x16x64xbf16>
    %14 = vector.shape_cast %13 : vector<1x16x64xbf16> to vector<16x64xbf16>
    %c37 = arith.constant 37 : index
    %c0_16 = arith.constant 0 : index
    %15 = vector.load %arg5[%c37, %c0_16] : memref<72x64xbf16, #tpu.memory_space<vmem>>, vector<16x64xbf16>
    tpu.vector_store %arg5[%c37, %c0_16], %14 {strides = array<i32>} : memref<72x64xbf16, #tpu.memory_space<vmem>>, vector<16x64xbf16>,
    %c54 = arith.constant 54 : index
    %c0_17 = arith.constant 0 : index
    %16 = vector.load %arg5[%c54, %c0_17] : memref<72x64xbf16, #tpu.memory_space<vmem>>, vector<1x64xbf16>
    tpu.vector_store %arg5[%c54, %c0_17], %0 {strides = array<i32>} : memref<72x64xbf16, #tpu.memory_space<vmem>>, vector<1x64xbf16>,
    %c71 = arith.constant 71 : index
    %c0_18 = arith.constant 0 : index
    %17 = vector.load %arg5[%c71, %c0_18] : memref<72x64xbf16, #tpu.memory_space<vmem>>, vector<1x64xbf16>
    tpu.vector_store %arg5[%c71, %c0_18], %0 {strides = array<i32>} : memref<72x64xbf16, #tpu.memory_space<vmem>>, vector<1x64xbf16>,
    %c3 = arith.constant 3 : index
    %c0_19 = arith.constant 0 : index
    %c0_20 = arith.constant 0 : index
    %18 = vector.load %arg1[%c3, %c0_19, %c0_20] : memref<4x16x64xbf16, #tpu.memory_space<vmem>>, vector<1x16x64xbf16>
    %19 = vector.shape_cast %18 : vector<1x16x64xbf16> to vector<16x64xbf16>
    %c55 = arith.constant 55 : index
    %c0_21 = arith.constant 0 : index
    %20 = vector.load %arg5[%c55, %c0_21] : memref<72x64xbf16, #tpu.memory_space<vmem>>, vector<16x64xbf16>
    tpu.vector_store %arg5[%c55, %c0_21], %19 {strides = array<i32>} : memref<72x64xbf16, #tpu.memory_space<vmem>>, vector<16x64xbf16>,
    %cst_22 = arith.constant 0.000000e+00 : f32
    %21 = vector.broadcast %cst_22 : f32 to vector<70x64xf32>
    %c0_23 = arith.constant 0 : index
    %c0_24 = arith.constant 0 : index
    %22 = vector.load %arg5[%c0_23, %c0_24] : memref<72x64xbf16, #tpu.memory_space<vmem>>, vector<70x64xbf16>
    %c0_25 = arith.constant 0 : index
    %c0_26 = arith.constant 0 : index
    %c0_27 = arith.constant 0 : index
    %23 = vector.load %arg2[%c0_25, %c0_26, %c0_27] : memref<3x64x64xbf16, #tpu.memory_space<vmem>>, vector<1x64x64xbf16>
    %24 = vector.shape_cast %23 : vector<1x64x64xbf16> to vector<64x64xbf16>
    %cst_28 = arith.constant dense<0.000000e+00> : vector<70x64xf32>
    %25 = tpu.matmul %22, %24, %cst_28 {dimension_numbers = #tpu.dot_dimension_numbers<[1], [0], [0], [1], [0, 0, 1, 1], [], []>} : vector<70x64xbf16>, vector<64x64xbf16>, vector<70x64xf32> -> vector<70x64xf32>
    %26 = arith.addf %21, %25 : vector<70x64xf32>
    %c1_29 = arith.constant 1 : index
    %c0_30 = arith.constant 0 : index
    %27 = vector.load %arg5[%c1_29, %c0_30] : memref<72x64xbf16, #tpu.memory_space<vmem>>, vector<70x64xbf16>
    %c1_31 = arith.constant 1 : index
    %c0_32 = arith.constant 0 : index
    %c0_33 = arith.constant 0 : index
    %28 = vector.load %arg2[%c1_31, %c0_32, %c0_33] : memref<3x64x64xbf16, #tpu.memory_space<vmem>>, vector<1x64x64xbf16>
    %29 = vector.shape_cast %28 : vector<1x64x64xbf16> to vector<64x64xbf16>
    %cst_34 = arith.constant dense<0.000000e+00> : vector<70x64xf32>
    %30 = tpu.matmul %27, %29, %cst_34 {dimension_numbers = #tpu.dot_dimension_numbers<[1], [0], [0], [1], [0, 0, 1, 1], [], []>} : vector<70x64xbf16>, vector<64x64xbf16>, vector<70x64xf32> -> vector<70x64xf32>
    %31 = arith.addf %26, %30 : vector<70x64xf32>
    %c2_35 = arith.constant 2 : index
    %c0_36 = arith.constant 0 : index
    %32 = vector.load %arg5[%c2_35, %c0_36] : memref<72x64xbf16, #tpu.memory_space<vmem>>, vector<70x64xbf16>
    %c2_37 = arith.constant 2 : index
    %c0_38 = arith.constant 0 : index
    %c0_39 = arith.constant 0 : index
    %33 = vector.load %arg2[%c2_37, %c0_38, %c0_39] : memref<3x64x64xbf16, #tpu.memory_space<vmem>>, vector<1x64x64xbf16>
    %34 = vector.shape_cast %33 : vector<1x64x64xbf16> to vector<64x64xbf16>
    %cst_40 = arith.constant dense<0.000000e+00> : vector<70x64xf32>
    %35 = tpu.matmul %32, %34, %cst_40 {dimension_numbers = #tpu.dot_dimension_numbers<[1], [0], [0], [1], [0, 0, 1, 1], [], []>} : vector<70x64xbf16>, vector<64x64xbf16>, vector<70x64xf32> -> vector<70x64xf32>
    %36 = arith.addf %31, %35 : vector<70x64xf32>
    %cst_41 = arith.constant 0.000000e+00 : f32
    %37 = vector.broadcast %cst_41 : f32 to vector<70x64xf32>
    %38 = arith.maximumf %36, %37 : vector<70x64xf32>
    %39 = vector.extract_strided_slice %38 {offsets = [0, 0], sizes = [16, 64], strides = [1, 1]} : vector<70x64xf32> to vector<16x64xf32>
    %40 = arith.truncf %39 : vector<16x64xf32> to vector<16x64xbf16>
    %c1_42 = arith.constant 1 : index
    %c0_43 = arith.constant 0 : index
    %41 = vector.load %arg5[%c1_42, %c0_43] : memref<72x64xbf16, #tpu.memory_space<vmem>>, vector<16x64xbf16>
    tpu.vector_store %arg5[%c1_42, %c0_43], %40 {strides = array<i32>} : memref<72x64xbf16, #tpu.memory_space<vmem>>, vector<16x64xbf16>,
    %42 = vector.extract_strided_slice %38 {offsets = [18, 0], sizes = [16, 64], strides = [1, 1]} : vector<70x64xf32> to vector<16x64xf32>
    %43 = arith.truncf %42 : vector<16x64xf32> to vector<16x64xbf16>
    %c19_44 = arith.constant 19 : index
    %c0_45 = arith.constant 0 : index
    %44 = vector.load %arg5[%c19_44, %c0_45] : memref<72x64xbf16, #tpu.memory_space<vmem>>, vector<16x64xbf16>
    tpu.vector_store %arg5[%c19_44, %c0_45], %43 {strides = array<i32>} : memref<72x64xbf16, #tpu.memory_space<vmem>>, vector<16x64xbf16>,
    %45 = vector.extract_strided_slice %38 {offsets = [36, 0], sizes = [16, 64], strides = [1, 1]} : vector<70x64xf32> to vector<16x64xf32>
    %46 = arith.truncf %45 : vector<16x64xf32> to vector<16x64xbf16>
    %c37_46 = arith.constant 37 : index
    %c0_47 = arith.constant 0 : index
    %47 = vector.load %arg5[%c37_46, %c0_47] : memref<72x64xbf16, #tpu.memory_space<vmem>>, vector<16x64xbf16>
    tpu.vector_store %arg5[%c37_46, %c0_47], %46 {strides = array<i32>} : memref<72x64xbf16, #tpu.memory_space<vmem>>, vector<16x64xbf16>,
    %48 = vector.extract_strided_slice %38 {offsets = [54, 0], sizes = [16, 64], strides = [1, 1]} : vector<70x64xf32> to vector<16x64xf32>
    %49 = arith.truncf %48 : vector<16x64xf32> to vector<16x64xbf16>
    %c55_48 = arith.constant 55 : index
    %c0_49 = arith.constant 0 : index
    %50 = vector.load %arg5[%c55_48, %c0_49] : memref<72x64xbf16, #tpu.memory_space<vmem>>, vector<16x64xbf16>
    tpu.vector_store %arg5[%c55_48, %c0_49], %49 {strides = array<i32>} : memref<72x64xbf16, #tpu.memory_space<vmem>>, vector<16x64xbf16>,
    %cst_50 = arith.constant 0.000000e+00 : f32
    %51 = vector.broadcast %cst_50 : f32 to vector<70x64xf32>
    %c0_51 = arith.constant 0 : index
    %c0_52 = arith.constant 0 : index
    %52 = vector.load %arg5[%c0_51, %c0_52] : memref<72x64xbf16, #tpu.memory_space<vmem>>, vector<70x64xbf16>
    %c0_53 = arith.constant 0 : index
    %c0_54 = arith.constant 0 : index
    %c0_55 = arith.constant 0 : index
    %53 = vector.load %arg3[%c0_53, %c0_54, %c0_55] : memref<3x64x64xbf16, #tpu.memory_space<vmem>>, vector<1x64x64xbf16>
    %54 = vector.shape_cast %53 : vector<1x64x64xbf16> to vector<64x64xbf16>
    %cst_56 = arith.constant dense<0.000000e+00> : vector<70x64xf32>
    %55 = tpu.matmul %52, %54, %cst_56 {dimension_numbers = #tpu.dot_dimension_numbers<[1], [0], [0], [1], [0, 0, 1, 1], [], []>} : vector<70x64xbf16>, vector<64x64xbf16>, vector<70x64xf32> -> vector<70x64xf32>
    %56 = arith.addf %51, %55 : vector<70x64xf32>
    %c1_57 = arith.constant 1 : index
    %c0_58 = arith.constant 0 : index
    %57 = vector.load %arg5[%c1_57, %c0_58] : memref<72x64xbf16, #tpu.memory_space<vmem>>, vector<70x64xbf16>
    %c1_59 = arith.constant 1 : index
    %c0_60 = arith.constant 0 : index
    %c0_61 = arith.constant 0 : index
    %58 = vector.load %arg3[%c1_59, %c0_60, %c0_61] : memref<3x64x64xbf16, #tpu.memory_space<vmem>>, vector<1x64x64xbf16>
    %59 = vector.shape_cast %58 : vector<1x64x64xbf16> to vector<64x64xbf16>
    %cst_62 = arith.constant dense<0.000000e+00> : vector<70x64xf32>
    %60 = tpu.matmul %57, %59, %cst_62 {dimension_numbers = #tpu.dot_dimension_numbers<[1], [0], [0], [1], [0, 0, 1, 1], [], []>} : vector<70x64xbf16>, vector<64x64xbf16>, vector<70x64xf32> -> vector<70x64xf32>
    %61 = arith.addf %56, %60 : vector<70x64xf32>
    %c2_63 = arith.constant 2 : index
    %c0_64 = arith.constant 0 : index
    %62 = vector.load %arg5[%c2_63, %c0_64] : memref<72x64xbf16, #tpu.memory_space<vmem>>, vector<70x64xbf16>
    %c2_65 = arith.constant 2 : index
    %c0_66 = arith.constant 0 : index
    %c0_67 = arith.constant 0 : index
    %63 = vector.load %arg3[%c2_65, %c0_66, %c0_67] : memref<3x64x64xbf16, #tpu.memory_space<vmem>>, vector<1x64x64xbf16>
    %64 = vector.shape_cast %63 : vector<1x64x64xbf16> to vector<64x64xbf16>
    %cst_68 = arith.constant dense<0.000000e+00> : vector<70x64xf32>
    %65 = tpu.matmul %62, %64, %cst_68 {dimension_numbers = #tpu.dot_dimension_numbers<[1], [0], [0], [1], [0, 0, 1, 1], [], []>} : vector<70x64xbf16>, vector<64x64xbf16>, vector<70x64xf32> -> vector<70x64xf32>
    %66 = arith.addf %61, %65 : vector<70x64xf32>
    %c0_69 = arith.constant 0 : index
    %c0_70 = arith.constant 0 : index
    %c0_71 = arith.constant 0 : index
    %67 = vector.load %arg1[%c0_69, %c0_70, %c0_71] : memref<4x16x64xbf16, #tpu.memory_space<vmem>>, vector<1x16x64xbf16>
    %68 = vector.shape_cast %67 : vector<1x16x64xbf16> to vector<16x64xbf16>
    %69 = arith.extf %68 : vector<16x64xbf16> to vector<16x64xf32>
    %70 = vector.extract_strided_slice %66 {offsets = [0, 0], sizes = [16, 64], strides = [1, 1]} : vector<70x64xf32> to vector<16x64xf32>
    %71 = arith.addf %70, %69 : vector<16x64xf32>
    %cst_72 = arith.constant 0.000000e+00 : f32
    %72 = vector.broadcast %cst_72 : f32 to vector<16x64xf32>
    %73 = arith.maximumf %71, %72 : vector<16x64xf32>
    %c0_73 = arith.constant 0 : index
    %c0_74 = arith.constant 0 : index
    %c0_75 = arith.constant 0 : index
    %74 = vector.load %arg4[%c0_73, %c0_74, %c0_75] : memref<4x16x64xf32, #tpu.memory_space<vmem>>, vector<1x16x64xf32>
    %75 = vector.shape_cast %74 : vector<1x16x64xf32> to vector<16x64xf32>
    %76 = vector.shape_cast %73 : vector<16x64xf32> to vector<1x16x64xf32>
    tpu.vector_store %arg4[%c0_73, %c0_74, %c0_75], %76 {strides = array<i32>} : memref<4x16x64xf32, #tpu.memory_space<vmem>>, vector<1x16x64xf32>,
    %c1_76 = arith.constant 1 : index
    %c0_77 = arith.constant 0 : index
    %c0_78 = arith.constant 0 : index
    %77 = vector.load %arg1[%c1_76, %c0_77, %c0_78] : memref<4x16x64xbf16, #tpu.memory_space<vmem>>, vector<1x16x64xbf16>
    %78 = vector.shape_cast %77 : vector<1x16x64xbf16> to vector<16x64xbf16>
    %79 = arith.extf %78 : vector<16x64xbf16> to vector<16x64xf32>
    %80 = vector.extract_strided_slice %66 {offsets = [18, 0], sizes = [16, 64], strides = [1, 1]} : vector<70x64xf32> to vector<16x64xf32>
    %81 = arith.addf %80, %79 : vector<16x64xf32>
    %cst_79 = arith.constant 0.000000e+00 : f32
    %82 = vector.broadcast %cst_79 : f32 to vector<16x64xf32>
    %83 = arith.maximumf %81, %82 : vector<16x64xf32>
    %c1_80 = arith.constant 1 : index
    %c0_81 = arith.constant 0 : index
    %c0_82 = arith.constant 0 : index
    %84 = vector.load %arg4[%c1_80, %c0_81, %c0_82] : memref<4x16x64xf32, #tpu.memory_space<vmem>>, vector<1x16x64xf32>
    %85 = vector.shape_cast %84 : vector<1x16x64xf32> to vector<16x64xf32>
    %86 = vector.shape_cast %83 : vector<16x64xf32> to vector<1x16x64xf32>
    tpu.vector_store %arg4[%c1_80, %c0_81, %c0_82], %86 {strides = array<i32>} : memref<4x16x64xf32, #tpu.memory_space<vmem>>, vector<1x16x64xf32>,
    %c2_83 = arith.constant 2 : index
    %c0_84 = arith.constant 0 : index
    %c0_85 = arith.constant 0 : index
    %87 = vector.load %arg1[%c2_83, %c0_84, %c0_85] : memref<4x16x64xbf16, #tpu.memory_space<vmem>>, vector<1x16x64xbf16>
    %88 = vector.shape_cast %87 : vector<1x16x64xbf16> to vector<16x64xbf16>
    %89 = arith.extf %88 : vector<16x64xbf16> to vector<16x64xf32>
    %90 = vector.extract_strided_slice %66 {offsets = [36, 0], sizes = [16, 64], strides = [1, 1]} : vector<70x64xf32> to vector<16x64xf32>
    %91 = arith.addf %90, %89 : vector<16x64xf32>
    %cst_86 = arith.constant 0.000000e+00 : f32
    %92 = vector.broadcast %cst_86 : f32 to vector<16x64xf32>
    %93 = arith.maximumf %91, %92 : vector<16x64xf32>
    %c2_87 = arith.constant 2 : index
    %c0_88 = arith.constant 0 : index
    %c0_89 = arith.constant 0 : index
    %94 = vector.load %arg4[%c2_87, %c0_88, %c0_89] : memref<4x16x64xf32, #tpu.memory_space<vmem>>, vector<1x16x64xf32>
    %95 = vector.shape_cast %94 : vector<1x16x64xf32> to vector<16x64xf32>
    %96 = vector.shape_cast %93 : vector<16x64xf32> to vector<1x16x64xf32>
    tpu.vector_store %arg4[%c2_87, %c0_88, %c0_89], %96 {strides = array<i32>} : memref<4x16x64xf32, #tpu.memory_space<vmem>>, vector<1x16x64xf32>,
    %c3_90 = arith.constant 3 : index
    %c0_91 = arith.constant 0 : index
    %c0_92 = arith.constant 0 : index
    %97 = vector.load %arg1[%c3_90, %c0_91, %c0_92] : memref<4x16x64xbf16, #tpu.memory_space<vmem>>, vector<1x16x64xbf16>
    %98 = vector.shape_cast %97 : vector<1x16x64xbf16> to vector<16x64xbf16>
    %99 = arith.extf %98 : vector<16x64xbf16> to vector<16x64xf32>
    %100 = vector.extract_strided_slice %66 {offsets = [54, 0], sizes = [16, 64], strides = [1, 1]} : vector<70x64xf32> to vector<16x64xf32>
    %101 = arith.addf %100, %99 : vector<16x64xf32>
    %cst_93 = arith.constant 0.000000e+00 : f32
    %102 = vector.broadcast %cst_93 : f32 to vector<16x64xf32>
    %103 = arith.maximumf %101, %102 : vector<16x64xf32>
    %c3_94 = arith.constant 3 : index
    %c0_95 = arith.constant 0 : index
    %c0_96 = arith.constant 0 : index
    %104 = vector.load %arg4[%c3_94, %c0_95, %c0_96] : memref<4x16x64xf32, #tpu.memory_space<vmem>>, vector<1x16x64xf32>
    %105 = vector.shape_cast %104 : vector<1x16x64xf32> to vector<16x64xf32>
    %106 = vector.shape_cast %103 : vector<16x64xf32> to vector<1x16x64xf32>
    tpu.vector_store %arg4[%c3_94, %c0_95, %c0_96], %106 {strides = array<i32>} : memref<4x16x64xf32, #tpu.memory_space<vmem>>, vector<1x16x64xf32>,
    return
  }
  func.func @transform_0(%arg0: i32) -> (i32, i32, i32) {
    %c0_i32 = arith.constant 0 : i32
    %c0_i32_0 = arith.constant 0 : i32
    %c0_i32_1 = arith.constant 0 : i32
    return %arg0, %c0_i32, %c0_i32_0 : i32, i32, i32
  }
  func.func @transform_1(%arg0: i32) -> (i32, i32, i32) {
    %c0_i32 = arith.constant 0 : i32
    %c0_i32_0 = arith.constant 0 : i32
    %c0_i32_1 = arith.constant 0 : i32
    %c0_i32_2 = arith.constant 0 : i32
    return %c0_i32, %c0_i32_0, %c0_i32_1 : i32, i32, i32
  }
  func.func @transform_2(%arg0: i32) -> (i32, i32, i32) {
    %c0_i32 = arith.constant 0 : i32
    %c0_i32_0 = arith.constant 0 : i32
    %c0_i32_1 = arith.constant 0 : i32
    %c0_i32_2 = arith.constant 0 : i32
    return %c0_i32, %c0_i32_0, %c0_i32_1 : i32, i32, i32
  }
  func.func @transform_3(%arg0: i32) -> (i32, i32, i32) {
    %c0_i32 = arith.constant 0 : i32
    %c0_i32_0 = arith.constant 0 : i32
    %c0_i32_1 = arith.constant 0 : i32
    return %arg0, %c0_i32, %c0_i32_0 : i32, i32, i32
  }
}

</mosaic_0001>

<bundles_post_ra>
// kernel: tpu_custom_call.1
= control target key start
LH: loop header
LB: loop body
LE: loop exit
PB: predicated region body
PF: predicated region fallthrough
CT: control target
= control target key end

     0   :  { %8 = vsyncpa [#allocation4], 0  ;;  %s2981_s0 = inlined_call_operand.hbm [shape: bf16[8,16,64], index: 0, kind: input, shape index: {}]   ;;  %s2982_s1 = inlined_call_operand.hbm [shape: bf16[3,64,64], index: 1, kind: input, shape index: {}]   ;;  %s2983_s2 = inlined_call_operand.hbm [shape: bf16[3,64,64], index: 2, kind: input, shape index: {}]   ;;  %s2984_s3 = inlined_call_operand.hbm [shape: f32[8,16,64], index: 3, kind: output, shape index: {}]  }
   0x1   :  { %10 = vsyncpa [#allocation4 + $0x1], 0 }
   0x2   :  { %11 = vsyncpa [#allocation7], 0 }
   0x3   :  { %12 = vsyncpa [#allocation5], 0 }
   0x4   :  { %14 = vsyncpa [#allocation5 + $0x1], 0  ;;  %s2352_s12 = smov 0   ;;  %s2354_s13 = smov 0  }
   0x5   :  { %s2356_s14 = smov 0   ;;  %s2358_s15 = smov 0  }
   0x6 LB: > { %s2373_s16 = sadd.s32 4294967295, %s2320_s15   ;;  %s1685_s17 = sadd.s32 4294967294, %s2320_s15   ;;  %s2320_s15 = sphi %s2358_s15, %s3057_s15   ;;  %s2316_s14 = sphi %s2356_s14, %s3056_s14   ;;  %s2312_s13 = sphi %s2354_s13, %s3055_s13   ;;  %s2308_s12 = sphi %s2352_s12, %s3054_s12  }
   0x7   : > { %p40_p0 = scmp.ne.s32.totalorder %s2312_s13, %s2308_s12  ;;  %p2985_p1 = scmp.eq.s32.totalorder %s2373_s16, 0 }
   0x8   : > { %p106_p2 = scmp.eq.s32.totalorder %s2373_s16, 1  ;;  %p112_p3 = scmp.eq.s32.totalorder %s1685_s17, 1 }
   0x9   : > { %p2382_p4 = por %p2985_p1, %p40_p0  ;;  %p1686_p5 = scmp.ge.s32.totalorder %s2320_s15, 1 }
   0xa   : > { %p2387_p6 = por %p112_p3, %p40_p0  ;;  %p119_p7 = scmp.lt.s32.totalorder %s2320_s15, 3 }
   0xb   : > { %s2993_s18 = scalar_select %p2382_p4, 1, 0 }
   0xc   : > { %s2994_s19 = scalar_select %p2387_p6, 1, 0 }
   0xd   : > { %p2392_p8 = pnand %p1686_p5, %p119_p7  ;;  %s2322_s21 = smov [#allocation6]  }
   0xe   : > { %s131_s22 = sshll.u32 %s2322_s21, 4  ;;  %s2323_s24 = smov [#allocation8]   ;;  %s132_s22 = int_to_ptr.vmem [resolvable:$true] %s131_s22 }
   0xf   : > { %s2995_s20 = scalar_select %p2392_p8, 1, 0 }
  0x10   : > { %p2074_p9 = pneg %p2392_p8  ;;  %s144_s25 = sshll.u32 %s2323_s24, 4  ;;  %s145_s25 = int_to_ptr.vmem [resolvable:$true] %s144_s25 }
  0x11   : > { %s2183_s26 = scalar_lea.vmem %s132_s22, 1536  ;;  %p2191_p5 = scmp.lt.s32.totalorder %s132_s22, %s132_s22 }
  0x12   : > { %p2401_p11 = pnand %p2074_p9, %p2985_p1  ;;  %p2184_p13 = scmp.ne.s32.totalorder %s132_s22, %s2183_s26 }
  0x13   : > { %p2192_p7 = scmp.lt.s32.totalorder %s2183_s26, %s2183_s26 }
  0x14   : > { %p2174_p12 = pneg %p2401_p11 }
  0x15   : > { %p2193_p10 = por %p2192_p7, %p2191_p5 }
  0x16   : > { %p2186_p0 = pnand %p2184_p13, %p2174_p12 }
  0x18   : > { %p2187_p3 = pneg %p2186_p0 }
  0x1a   : > { %p2194_p9 = pnand %p2193_p10, %p2187_p3 }
  0x1c   : > { %2197 = shalt.err (!%p2194_p9)
}
  0x1d   : > { %s2324_s27 = smov 64   ;;  %s2325_s28 = smov 4  }
  0x1e   : > { %2077 = dma.hbm_to_vmem [thread:$0]  (!%p2401_p11), %s2982_s1, 1536, %s132_s22, [#allocation7], %s2324_s27, %s2324_s27, %s2325_s28  }
  0x1f   : > { %s2209_s4 = scalar_lea.vmem %s145_s25, 1536  ;;  %p2217_p10 = scmp.lt.s32.totalorder %s145_s25, %s145_s25 }
  0x20   : > { %p2210_p13 = scmp.ne.s32.totalorder %s145_s25, %s2209_s4  ;;  %p2218_p3 = scmp.lt.s32.totalorder %s2209_s4, %s2209_s4 }
  0x22   : > { %p2212_p0 = pnand %p2210_p13, %p2174_p12  ;;  %p2219_p7 = por %p2218_p3, %p2217_p10 }
  0x24   : > { %p2213_p5 = pneg %p2212_p0 }
  0x26   : > { %p2220_p9 = pnand %p2219_p7, %p2213_p5 }
  0x28   : > { %2223 = shalt.err (!%p2220_p9)
}
  0x29   : > { %2080 = dma.hbm_to_vmem [thread:$0]  (!%p2401_p11), %s2983_s2, 1536, %s145_s25, [#allocation7], %s2324_s27, %s2324_s27, %s2325_s28  }
  0x2a   : > { %s2430_s7 = sadd.s32 1, %s2320_s15   ;;  %s27_s8 = sadd.s32 1, %s2316_s14 }
  0x2b   : > { %s24_s9 = ssub.s32 %s2320_s15, %s2430_s7  ;;  %p34_p12 = scmp.ne.s32.totalorder %s2316_s14, %s2312_s13 }
  0x2c   : > { %p25_p13 = scmp.eq.s32.totalorder %s24_s9, 0  ;;  %p35_p0 = scmp.eq.s32.totalorder %s2320_s15, 0 }
  0x2d   : > { %p2440_p5 = por %p106_p2, %p34_p12  ;;  %p2091_p10 = scmp.lt.s32.totalorder %s2320_s15, 2 }
  0x2e   : > { %s2446_s11 = scalar_select %p25_p13, %s2316_s14, %s27_s8  }
  0x2f   : > { %s2997_s10 = scalar_select %p2440_p5, 1, 0 }
  0x30   : > { %p36_p3 = por %p35_p0, %p34_p12  ;;  %s158_s17 = sand.u32 1, %s2316_s14  }
  0x31   : > { %s1690_s21 = sshll.u32 %s158_s17, 5  ;;  %s1807_s22 = sshll.u32 %s2320_s15, 9 }
  0x32   : > { %s2453_s25 = scalar_lea.hbm %s2981_s0, %s1807_s22  ;;  %s162_s26 = scalar_lea.vmem [#allocation3], %s1690_s21 }
  0x33   : > { %s170_s29 = sshll.u32 %s162_s26, 4  ;;  %p2457_p2 = pnand %p2091_p10, %p36_p3  ;;  %s2455_s29 = int_to_ptr.vmem [resolvable:$true] %s170_s29 }
  0x34   : > { %s2461_s4 = scalar_lea.sflag [#allocation4], %s158_s17  ;;  %s2224_s5 = scalar_lea.hbm %s2453_s25, 512 }
  0x35   : > { %p2225_p11 = scmp.ne.s32.totalorder %s2453_s25, %s2224_s5  ;;  %p2226_p7 = pneg %p2457_p2 }
  0x36   : > { %s2229_s9 = scalar_lea.hbm %s2981_s0, 1024  ;;  %p2230_p13 = scmp.lt.s32.totalorder %s2453_s25, %s2981_s0 }
  0x37   : > { %p2227_p9 = pnand %p2226_p7, %p2225_p11  ;;  %p2231_p0 = scmp.lt.s32.totalorder %s2229_s9, %s2224_s5 }
  0x39   : > { %p2228_p12 = pneg %p2227_p9  ;;  %p2232_p10 = por %p2231_p0, %p2230_p13 }
  0x3b   : > { %p2233_p3 = pnand %p2232_p10, %p2228_p12 }
  0x3d   : > { %2236 = shalt.err (!%p2233_p3)
}
  0x3e   : > { %s2237_s17 = scalar_lea.vmem %s2455_s29, 512  ;;  %s2326_s23 = smov [#allocation3]  }
  0x3f   : > { %p2238_p1 = scmp.ne.s32.totalorder %s2455_s29, %s2237_s17  ;;  %s2242_s24 = sshll.u32 %s2326_s23, 4  ;;  %s2243_s24 = int_to_ptr.vmem [resolvable:$false] %s2242_s24 }
  0x40   : > { %s2244_s26 = scalar_lea.vmem %s2243_s24, 1024  ;;  %p2245_p9 = scmp.lt.s32.totalorder %s2455_s29, %s2243_s24 }
  0x41   : > { %p2240_p6 = pnand %p2238_p1, %p2226_p7  ;;  %p2246_p5 = scmp.lt.s32.totalorder %s2244_s26, %s2237_s17 }
  0x43   : > { %p2241_p11 = pneg %p2240_p6  ;;  %p2247_p4 = por %p2246_p5, %p2245_p9 }
  0x45   : > { %p2248_p8 = pnand %p2247_p4, %p2241_p11 }
  0x47   : > { %2251 = shalt.err (!%p2248_p8)
}
  0x48   : > { %2084 = dma.hbm_to_vmem [thread:$0]  (!%p2457_p2), %s2453_s25, 512, %s2455_s29, %s2461_s4, %s2324_s27, %s2324_s27, %s2325_s28  }
  0x49   : > { %p2999_p1 = scmp.ne.s32.totalorder %s2995_s20, 0 }
  0x4a   : > { %s2488_s5 = sand.u32 (!%p2999_p1), 1, %s2312_s13   ;;  %p3000_p4 = scmp.ne.s32.totalorder (!%p2999_p1), %s2993_s18, 0 }
  0x4b   : > { %182 = sbr.rel (%p2999_p1) target bundleno = 680 (0x2a8), region = 32  ;;  %s1695_s6 = sshll.u32 (!%p2999_p1), %s2488_s5, 5 }
  0x4c   : > { %s185_s8 = scalar_lea.sflag (!%p2999_p1), [#allocation4], %s2488_s5  ;;  %s2492_s9 = scalar_lea.vmem (!%p2999_p1), [#allocation3], %s1695_s6 }
  0x50   : > { %2295 = dma.done.wait (%p3000_p4), %s185_s8, 512  }
  0x51   : > { %2297 = vsyncadd (%p3000_p4), %s185_s8, 4294966784  ;;  %p3001_p6 = scmp.eq.s32.totalorder %s2373_s16, 0 }
  0x53   : > { %2299 = dma.done.wait (%p3001_p6), [#allocation7], 3072   ;;  %p3002_p8 = pmov %p3001_p6 }
  0x54   : > { %v2327_v0 = vmov 0.0   ;;  %vm2989_vm0 = vmmov 0   ;;  %vm222_vm1 = vcmask 516096   ;;  %vm223_vm2 = vsmask.f32 256  ;;  %v2135_v2 = vld [vmem:[#allocation6 + $0x38] sm:$0xff]  }
  0x55   : > { %2301 = vsyncadd (%p3002_p8), [#allocation7], 4294964224  ;;  %1894 = vmatprep.subr.bf16.mxu0 %v2327_v0  ;;  %1922 = vmatprep.subr.bf16.mxu1 %v2327_v0  ;;  %vm228_vm4 = vsmask.f32 7938  ;;  %vm268_vm5 = vsmask.f32 1280 }
  0x56   : > { %1902 = vmatprep.mubr.msk.bf16.mxu0 %vm2989_vm0, %v2327_v0  ;;  %1930 = vmatprep.mubr.msk.bf16.mxu1 %vm2989_vm0, %v2327_v0  ;;  %vm2510_vm3 = vmand %vm222_vm1, %vm223_vm2  ;;  %vm235_vm6 = vsmask.f32 4368  ;;  %v2136_v3 = vld [vmem:[#allocation6 + $0x18] sm:$0xff]   ;;  %vm273_vm7 = vsmask.f32 7942  ;;  %v2137_v4 = vld [vmem:[#allocation6 + $0x30] sm:$0xff]  }
  0x57   : > { %1895 = vmatpush3.bf16.msra.mxu0 %v2135_v2  ;;  %vm267_vm8 = vcmask 517121   ;;  %1923 = vmatpush3.bf16.msra.mxu1 %v2136_v3  ;;  %v2138_v5 = vld [vmem:[#allocation6 + $0x10] sm:$0xff]   ;;  %vm257_vm9 = vcmask 519168   ;;  %vm2518_vm10 = vmand %vm222_vm1, %vm228_vm4  ;;  %vm281_vm11 = vsmask.f32 5392  ;;  %v2139_v8 = vld [vmem:[#allocation6 + $0x28] sm:$0xff]  }
  0x58   : > { %1896 = vmatprep.subr.bf16.mxu0 %v2327_v0  ;;  %1924 = vmatprep.subr.bf16.mxu1 %v2327_v0  ;;  %vm2524_vm12 = vmand %vm267_vm8, %vm268_vm5  ;;  %vm2991_vm13 = vsmask.f32 2304  ;;  %vm305_vm14 = vcmask 519169   ;;  %v2140_v9 = vld [vmem:[#allocation6 + $0x8] sm:$0xff]   ;;  %vm316_vm1 = vcmask 518146   ;;  %v2141_v10 = vld [vmem:[#allocation6 + $0x20] sm:$0xff]  }
  0x59   : > { %v225_v11 = vld [vmem:[#allocation2] sm:$0x1]  ;;  %v230_v12 = vld [vmem:[#allocation2 + $0x8] sm:$0x1]  ;;  %v233_v13 = vld [vmem:[%s2492_s9] sm:$0xf] }
  0x5a   : > { %v2142_v14 = vld [vmem:[#allocation6] sm:$0xff]   ;;  %v226_v15 = vsel %vm2510_vm3, 0, %v225_v11  ;;  %v231_v16 = vsel %vm2518_vm10, 0, %v230_v12  ;;  %v238_v18 = vshrl.u32 %v233_v13, 16  ;;  %v241_v19 = vshll.u32 %v233_v13, 16  ;;  %vm2540_vm15 = vmor %vm223_vm2, %vm235_vm6  ;;  %s1698_s18 = sshll.u32 %s2488_s5, 6 }
  0x5b   : > { %1897 = vmatpush3.bf16.msra.mxu0 %v2137_v4  ;;  %1925 = vmatpush3.bf16.msra.mxu1 %v2138_v5  ;;  %v234_v17 = vld [vmem:[%s2492_s9 + $0x4] sm:$0xf]  ;;  %227 = vst [vmem:[#allocation2] sm:$0x1] %v226_v15  ;;  %232 = vst [vmem:[#allocation2 + $0x8] sm:$0x1] %v231_v16 }
  0x5c   : > { %1898 = vmatprep.subr.bf16.mxu0 %v2327_v0  ;;  %1926 = vmatprep.subr.bf16.mxu1 %v2327_v0  ;;  %v246_v20 = vshrl.u32 %v234_v17, 16  ;;  %v249_v21 = vshll.u32 %v234_v17, 16  ;;  %v270_v22 = vld [vmem:[#allocation2 + $0x8] sm:$0x2]  ;;  %v1699_v23 = vld [vmem:[%s2492_s9 + $0x8] sm:$0xf]  ;;  %vm2550_vm2 = vmand %vm267_vm8, %vm273_vm7 }
  0x5d   : > { %v240_v25 = vrot.slane %v238_v18, 7  ;;  %v271_v26 = vsel %vm2524_vm12, 0, %v270_v22  ;;  %v1700_v27 = vld [vmem:[%s2492_s9 + $0xc] sm:$0xf]  ;;  %v284_v28 = vshrl.u32 %v1699_v23, 16  ;;  %v287_v29 = vshll.u32 %v1699_v23, 16  ;;  %vm2556_vm12 = vmand %vm316_vm1, %vm2991_vm13 }
  0x5e   : > { %v248_v30 = vrot.slane %v246_v20, 7  ;;  %272 = vst [vmem:[#allocation2 + $0x8] sm:$0x2] %v271_v26  ;;  %v293_v31 = vshrl.u32 %v1700_v27, 16  ;;  %v296_v32 = vshll.u32 %v1700_v27, 16  ;;  %vm2992_vm10 = vcmask 517120   ;;  %vm2562_vm8 = vmand %vm257_vm9, %vm228_vm4 }
  0x5f   : > { %1899 = vmatpush3.bf16.msra.mxu0 %v2139_v8  ;;  %1927 = vmatpush3.bf16.msra.mxu1 %v2140_v9  ;;  %v243_v34 = vor.u32 %v241_v19, %v240_v25  ;;  %v244_v35 = vrot.slane %v240_v25, 4  ;;  %v286_v36 = vrot.slane %v284_v28, 6  ;;  %v289_v37 = vrot.slane %v287_v29, 7  ;;  %v275_v44 = vld [vmem:[#allocation2 + $0x10] sm:$0x2]  ;;  %vm2569_vm6 = vmor %vm268_vm5, %vm281_vm11  ;;  %v2170_v24 = vld [vmem:[#allocation8 + $0x40] sm:$0xff]  }
  0x60   : > { %1900 = vmatprep.subr.bf16.mxu0 %v2327_v0  ;;  %1928 = vmatprep.subr.bf16.mxu1 %v2327_v0  ;;  %v251_v39 = vor.u32 %v249_v21, %v248_v30  ;;  %v253_v40 = vrot.slane %v248_v30, 4  ;;  %v295_v42 = vrot.slane %v293_v31, 6  ;;  %v298_v43 = vrot.slane %v296_v32, 7  ;;  %v319_v48 = vld [vmem:[#allocation2 + $0x10] sm:$0x4]  ;;  %vm2580_vm13 = vmand %vm305_vm14, %vm273_vm7  ;;  %s2899_s20 = scalar_lea.vmem [#allocation9], %s1698_s18 }
  0x61   : > { %v290_v46 = vor.u32 %v289_v37, %v286_v36  ;;  %v276_v47 = vsel %vm2550_vm2, 0, %v275_v44  ;;  %v1701_v49 = vld [vmem:[%s2492_s9 + $0x10] sm:$0xf]  ;;  %vm365_vm4 = vcmask 519171   ;;  %v320_v53 = vsel %vm2556_vm12, 0, %v319_v48  ;;  %s1820_s27 = sshll.u32 %s2373_s16, 10 }
  0x62   : > { %v252_v50 = vsel %vm2540_vm15, %v244_v35, %v251_v39  ;;  %v299_v51 = vor.u32 %v298_v43, %v295_v42  ;;  %277 = vst [vmem:[#allocation2 + $0x10] sm:$0x2] %v276_v47  ;;  %v1702_v54 = vld [vmem:[%s2492_s9 + $0x14] sm:$0xf]  ;;  %v333_v55 = vshrl.u32 %v1701_v49, 16  ;;  %v336_v59 = vshll.u32 %v1701_v49, 16  ;;  %s2935_s30 = scalar_lea.hbm %s2984_s3, %s1820_s27 }
  0x63   : > { %1901 = vmatpush3.bf16.msra.mxu0 %v2141_v10  ;;  %1929 = vmatpush3.bf16.msra.mxu1 %v2142_v14  ;;  %v259_v56 = vld [vmem:[#allocation2] sm:$0xf]  ;;  %263 = vst.msk [vmem:[#allocation2 + $0x4] sm:$0xf] %vm257_vm9, %v252_v50  ;;  %v264_v57 = vld [vmem:[#allocation2 + $0x8] sm:$0x1] }
  0x64   : > { %1950 = vmatprep.subr.bf16.mxu0 %v2327_v0  ;;  %1978 = vmatprep.subr.bf16.mxu1 %v2327_v0  ;;  %v291_v58 = vrot.slane %v290_v46, 4  ;;  %321 = vst [vmem:[#allocation2 + $0x10] sm:$0x4] %v320_v53  ;;  %vm3021_vm7 = vsmask.f32 7946  ;;  %v260_v61 = vsel %vm2562_vm8, %v243_v34, %v259_v56  ;;  %v265_v62 = vsel %vm2510_vm3, %v253_v40, %v264_v57  ;;  %s1593_s28 = sshll.u32 %s2899_s20, 4  ;;  %s2937_s28 = int_to_ptr.vmem [resolvable:$true] %s1593_s28 }
  0x65   : > { %vm2591_vm14 = vmand %vm316_vm1, %vm3021_vm7  ;;  %vm525_vm2 = vcmask 523264   ;;  %v335_v63 = vrot.slane %v333_v55, 5  ;;  %vm354_vm12 = vcmask 519170   ;;  %v324_v2 = vld [vmem:[#allocation2 + $0x18] sm:$0x4]  ;;  %v338_v6 = vrot.slane %v336_v59, 6 }
  0x66   : > { %vm3024_vm11 = vsmask.f32 3328  ;;  %261 = vst [vmem:[#allocation2] sm:$0xf] %v260_v61  ;;  %266 = vst [vmem:[#allocation2 + $0x8] sm:$0x1] %v265_v62  ;;  %v300_v4 = vsel %vm2569_vm6, %v291_v58, %v299_v51 }
  0x67   : > { %vm2601_vm0 = vmand %vm365_vm4, %vm3024_vm11  ;;  %v307_v5 = vld [vmem:[#allocation2 + $0x8] sm:$0xe]  ;;  %v342_v7 = vshrl.u32 %v1702_v54, 16  ;;  %v345_v8 = vshll.u32 %v1702_v54, 16  ;;  %v301_v9 = vrot.slane %v299_v51, 4  ;;  %v325_v12 = vsel %vm2591_vm14, 0, %v324_v2 }
  0x68   : > { %v308_v10 = vsel %vm2580_vm13, %v290_v46, %v307_v5  ;;  %310 = vst.msk [vmem:[#allocation2 + $0xc] sm:$0xf] %vm257_vm9, %v300_v4  ;;  %vm2612_vm1 = vmand %vm2992_vm10, %vm268_vm5  ;;  %v368_v13 = vld [vmem:[#allocation2 + $0x18] sm:$0x8]  ;;  %v1703_v14 = vld [vmem:[%s2492_s9 + $0x18] sm:$0xf]  ;;  %v339_v16 = vor.u32 %v338_v6, %v335_v63 }
  0x69   : > { %309 = vst [vmem:[#allocation2 + $0x8] sm:$0xe] %v308_v10  ;;  %vm3029_vm6 = vsmask.f32 6416  ;;  %vm3030_vm11 = vsmask.f32 2304 }
  0x6a   : > { %vm2621_vm7 = vmor %vm3030_vm11, %vm3029_vm6  ;;  %v344_v17 = vrot.slane %v342_v7, 5  ;;  %v347_v18 = vrot.slane %v345_v8, 6  ;;  %326 = vst [vmem:[#allocation2 + $0x18] sm:$0x4] %v325_v12  ;;  %v369_v19 = vsel %vm2601_vm0, 0, %v368_v13  ;;  %v382_v22 = vshll.u32 %v1703_v14, 16 }
  0x6b   : > { %v1704_v20 = vld [vmem:[%s2492_s9 + $0x1c] sm:$0xf]  ;;  %vm3033_vm5 = vsmask.f32 7946  ;;  %370 = vst [vmem:[#allocation2 + $0x18] sm:$0x8] %v369_v19 }
  0x6c   : > { %vm2630_vm14 = vmand %vm354_vm12, %vm3033_vm5  ;;  %v385_v23 = vshrl.u32 %v1703_v14, 16  ;;  %v391_v25 = vshll.u32 %v1704_v20, 16  ;;  %v395_v26 = vshrl.u32 %v1704_v20, 16  ;;  %v313_v27 = vld [vmem:[#allocation2 + $0x10] sm:$0x3]  ;;  %v340_v28 = vrot.slane %v339_v16, 4 }
  0x6d   : > { %v348_v29 = vor.u32 %v347_v18, %v344_v17  ;;  %vm360_vm6 = vcmask 518144   ;;  %vm3036_vm11 = vsmask.f32 7950  ;;  %v2640_v31 = vld [vmem:[#allocation2 + $0x4] sm:$0xf]  ;;  %v314_v32 = vsel %vm2612_vm1, %v301_v9, %v313_v27  ;;  %v2145_v62 = vld [vmem:[#allocation6 + $0x58] sm:$0xff]  }
  0x6e   : > { %vm2636_vm10 = vmand %vm365_vm4, %vm3036_vm11  ;;  %v356_v33 = vld [vmem:[#allocation2 + $0x10] sm:$0xc]  ;;  %v384_v34 = vrot.slane %v382_v22, 5  ;;  %v387_v35 = vrot.slane %v385_v23, 4  ;;  %315 = vst [vmem:[#allocation2 + $0x10] sm:$0x3] %v314_v32 }
  0x6f   : > { %v349_v36 = vsel %vm2621_vm7, %v340_v28, %v348_v29  ;;  %v350_v37 = vrot.slane %v348_v29, 4  ;;  %v357_v38 = vsel %vm2630_vm14, %v339_v16, %v356_v33  ;;  %v393_v39 = vrot.slane %v391_v25, 5  ;;  %v373_v40 = vld [vmem:[#allocation2 + $0x20] sm:$0x8]  ;;  %v2147_v14 = vld [vmem:[#allocation6 + $0x50] sm:$0xff]   ;;  %v2149_v18 = vld [vmem:[#allocation6 + $0x48] sm:$0xff]  }
  0x70   : > { %v411_v42 = vld [vmem:[#allocation2] sm:$0xf]  ;;  %358 = vst [vmem:[#allocation2 + $0x10] sm:$0xc] %v357_v38  ;;  %359 = vst.msk [vmem:[#allocation2 + $0x14] sm:$0xf] %vm257_vm9, %v349_v36  ;;  %v388_v44 = vor.u32 %v387_v35, %v384_v34 }
  0x71   : > { %vm3039_vm0 = vsmask.f32 2304  ;;  %v374_v45 = vsel %vm2636_vm10, 0, %v373_v40  ;;  %v397_v46 = vrot.slane %v395_v26, 4  ;;  %v1705_v47 = vcombine.low %v411_v42, %v2640_v31  ;;  %v2664_v49 = vld [vmem:[#allocation2 + $0x8] sm:$0xff]   ;;  %s1579_s16 = scalar_lea.sflag [#allocation5], %s2488_s5 }
  0x72   : > { %vm2651_vm4 = vmand %vm360_vm6, %vm3039_vm0  ;;  %vm461_vm12 = vsmask.f32 7424  ;;  %vm3042_vm7 = vsmask.f32 7440  ;;  %vm3043_vm5 = vsmask.f32 3328 }
  0x73   : > { %vm2660_vm11 = vmor %vm3043_vm5, %vm3042_vm7  ;;  %375 = vst [vmem:[#allocation2 + $0x20] sm:$0x8] %v374_v45  ;;  %v362_v50 = vld [vmem:[#allocation2 + $0x18] sm:$0x7]  ;;  %v389_v51 = vrot.slane %v388_v44, 4  ;;  %v398_v53 = vor.u32 %v397_v46, %v393_v39  ;;  %v463_v54 = vshrl.u32 %v1705_v47, 16  ;;  %1931 = vmatmul.mubr.msk.bf16.vlgmr.msra.gmra.mxu1 %vm525_vm2, %v1705_v47 }
  0x74   : > { %v465_v55 = vshll.u32 %v1705_v47, 16  ;;  %v363_v56 = vsel %vm2651_vm4, %v350_v37, %v362_v50  ;;  %v403_v57 = vld [vmem:[#allocation2 + $0x18] sm:$0x8]  ;;  %v470_v58 = vshll.u32 %v2664_v49, 16  ;;  %vm3046_vm6 = vmmov 0   ;;  %vm3047_vm0 = vmmov %vm3043_vm5  ;;  %v2151_v25 = vld [vmem:[#allocation6 + $0x40] sm:$0xff]  }
  0x75   : > { %1934 = vmatprep.mubr.msk.bf16.mxu1 %vm3046_vm6, %v2327_v0  ;;  %364 = vst [vmem:[#allocation2 + $0x18] sm:$0x7] %v363_v56  ;;  %v394_v59 = vsel %vm2660_vm11, %v389_v51, %v393_v39  ;;  %v404_v60 = vsel %vm2636_vm10, %v384_v34, %v403_v57  ;;  %v399_v63 = vrot.slane %v398_v53, 4  ;;  %vm2679_vm7 = vmand %vm257_vm9, %vm3047_vm0  ;;  %v474_v6 = vshrl.u32 %v2664_v49, 16  ;;  %v723_v36 = vld [vmem:[#allocation2] sm:$0xe] }
  0x76   : > { %v467_v61 = vrot.slane %v465_v55, 1  ;;  %405 = vst [vmem:[#allocation2 + $0x18] sm:$0x8] %v404_v60  ;;  %406 = vst.msk [vmem:[#allocation2 + $0x1c] sm:$0xf] %vm257_vm9, %v394_v59  ;;  %v472_v2 = vrot.slane %v470_v58, 1  ;;  %v1729_v38 = vcombine.low %v723_v36, %v2640_v31 }
  0x77   : > { %v2683_v5 = vld [vmem:[#allocation2 + $0x10] sm:$0xff]   ;;  %v738_v40 = vrot.slane %v2664_v49, 1  ;;  %vm736_vm5 = vcmask 1046528   ;;  %v2153_v50 = vld [vmem:[#allocation8 + $0x38] sm:$0xff]   ;;  %v2159_v55 = vld [vmem:[#allocation8] sm:$0xff]   ;;  %s2252_s4 = scalar_lea.vmem %s2937_s28, 1024 }
  0x78   : > { %v468_v4 = vor.u32 %v467_v61, %v463_v54  ;;  %v478_v9 = vshll.u32 %v2683_v5, 16  ;;  %v476_v12 = vor.u32 %v474_v6, %v472_v2  ;;  %v482_v16 = vshrl.u32 %v2683_v5, 16  ;;  %1979 = vmatpush3.bf16.msra.mxu1 %v2153_v50  ;;  %v2156_v51 = vld [vmem:[#allocation8 + $0x10] sm:$0xff]   ;;  %v2158_v53 = vld [vmem:[#allocation8 + $0x8] sm:$0xff]   ;;  %v2161_v57 = vld [vmem:[#allocation8 + $0x20] sm:$0xff]   ;;  %p2253_p5 = scmp.ne.s32.totalorder %s2937_s28, %s2252_s4  ;;  %p3051_p2 = scmp.ne.s32.totalorder %s2997_s10, 0 }
  0x79   : > { %v737_v39 = vrot.slane %v1729_v38, 1  ;;  %v740_v44 = vrot.slane %v2683_v5, 1  ;;  %1980 = vmatprep.subr.bf16.mxu1 %v2327_v0  ;;  %v2154_v54 = vld [vmem:[#allocation8 + $0x30] sm:$0xff]   ;;  %v2157_v56 = vld [vmem:[#allocation8 + $0x28] sm:$0xff]   ;;  %s2329_s21 = smov [#allocation9]  }
  0x7a   : > { %v408_v7 = vld [vmem:[#allocation2 + $0x20] sm:$0xf]  ;;  %v473_v8 = vsel %vm461_vm12, %v468_v4, %v472_v2  ;;  %v480_v13 = vrot.slane %v478_v9, 1  ;;  %v991_v52 = vld [vmem:[#allocation2 + $0x10] sm:$0xc]  ;;  %p2254_p7 = pnand %p2253_p5, %p3051_p2  ;;  %s2256_s22 = sshll.u32 %s2329_s21, 4  ;;  %s2257_s22 = int_to_ptr.vmem [resolvable:$false] %s2256_s22 }
  0x7b   : > { %v409_v10 = vsel %vm2679_vm7, %v399_v63, %v408_v7  ;;  %1903 = vmatmul.mubr.msk.bf16.vlgmr.msra.gmra.mxu0 %vm525_vm2, %v473_v8  ;;  %1935 = vmatmul.mubr.msk.bf16.gmra.mxu1 %vm525_vm2, %v2664_v49  ;;  %v739_v42 = vsel %vm736_vm5, %v737_v39, %v738_v40  ;;  %v741_v31 = vsel %vm736_vm5, %v738_v40, %v740_v44  ;;  %v2155_v49 = vld [vmem:[#allocation8 + $0x18] sm:$0xff]   ;;  %s2258_s17 = scalar_lea.vmem %s2257_s22, 2048  ;;  %p2259_p13 = scmp.lt.s32.totalorder %s2937_s28, %s2257_s22 }
  0x7c   : > { %410 = vst [vmem:[#allocation2 + $0x20] sm:$0xf] %v409_v10  ;;  %1951 = vmatpush3.bf16.msra.mxu0 %v2145_v62  ;;  %1906 = vmatprep.mubr.msk.bf16.mxu0 %vm3046_vm6, %v2327_v0  ;;  %v481_v19 = vsel %vm461_vm12, %v476_v12, %v480_v13  ;;  %v484_v20 = vor.u32 %v482_v16, %v480_v13  ;;  %p2255_p12 = pneg %p2254_p7  ;;  %p2260_p0 = scmp.lt.s32.totalorder %s2258_s17, %s2252_s4 }
  0x7d   : > { %1952 = vmatprep.subr.bf16.mxu0 %v2327_v0  ;;  %v2148_v15 = vld [vmem:[#allocation2 + $0x18] sm:$0xff]   ;;  %1938 = vmatprep.mubr.msk.bf16.mxu1 %vm3046_vm6, %v2327_v0 }
  0x7e   : > { %v486_v17 = vshll.u32 %v2148_v15, 16  ;;  %v490_v27 = vshrl.u32 %v2148_v15, 16  ;;  %v742_v45 = vrot.slane %v2148_v15, 1  ;;  %1981 = vmatpush3.bf16.msra.mxu1 %v2154_v54  ;;  %p2261_p10 = por %p2260_p0, %p2259_p13 }
  0x7f   : > { %1982 = vmatprep.subr.bf16.mxu1 %v2327_v0 }
  0x80   : > { %1953 = vmatpush3.bf16.msra.mxu0 %v2147_v14  ;;  %v488_v22 = vrot.slane %v486_v17, 1  ;;  %v743_v46 = vsel %vm736_vm5, %v740_v44, %v742_v45  ;;  %p2262_p3 = pnand %p2261_p10, %p2255_p12 }
  0x81   : > { %1954 = vmatprep.subr.bf16.mxu0 %v2327_v0 }
  0x82   : > { %v489_v26 = vsel %vm461_vm12, %v484_v20, %v488_v22  ;;  %v492_v29 = vor.u32 %v490_v27, %v488_v22  ;;  %1983 = vmatpush3.bf16.msra.mxu1 %v2157_v56 }
  0x83   : > { %1907 = vmatmul.mubr.msk.bf16.gmra.mxu0 %vm525_vm2, %v481_v19  ;;  %v2150_v23 = vld [vmem:[#allocation2 + $0x20] ss:$0 sps:$4 sm:$0xff]   ;;  %1939 = vmatmul.mubr.msk.bf16.gmra.mxu1 %vm525_vm2, %v2683_v5 }
  0x84   : > { %1910 = vmatprep.mubr.msk.bf16.mxu0 %vm3046_vm6, %v2327_v0  ;;  %1955 = vmatpush3.bf16.msra.mxu0 %v2149_v18  ;;  %v494_v28 = vshll.u32 %v2150_v23, 16  ;;  %v2152_v34 = vld [vmem:[#allocation2 + $0x20] ss:$0 sps:$4 sm:$0x77]   ;;  %v498_v35 = vshrl.u32 %v2150_v23, 16  ;;  %v744_v47 = vrot.slane %v2150_v23, 1 }
  0x85   : > { %1956 = vmatprep.subr.bf16.mxu0 %v2327_v0  ;;  %1942 = vmatprep.mubr.msk.bf16.mxu1 %vm3046_vm6, %v2327_v0 }
  0x86   : > { %v496_v32 = vrot.slane %v494_v28, 1  ;;  %v745_v48 = vsel %vm736_vm5, %v742_v45, %v744_v47  ;;  %1984 = vmatprep.subr.bf16.mxu1 %v2327_v0 }
  0x87   : > { %1985 = vmatpush3.bf16.msra.mxu1 %v2161_v57 }
  0x88   : > { %1957 = vmatpush3.bf16.msra.mxu0 %v2151_v25  ;;  %v497_v33 = vsel %vm461_vm12, %v492_v29, %v496_v32  ;;  %v500_v37 = vor.u32 %v498_v35, %v496_v32  ;;  %2034 = vmatprep.subr.bf16.mxu1 %v2327_v0 }
  0x89   : > { %2006 = vmatprep.subr.bf16.mxu0 %v2327_v0 }
  0x8b   : > { %1911 = vmatmul.mubr.msk.bf16.gmra.mxu0 %vm525_vm2, %v489_v26  ;;  %1943 = vmatmul.mubr.msk.bf16.gmra.mxu1 %vm525_vm2, %v2148_v15 }
  0x8c   : > { %1914 = vmatprep.mubr.msk.bf16.mxu0 %vm3046_vm6, %v2327_v0  ;;  %1946 = vmatprep.mubr.msk.bf16.mxu1 %vm3046_vm6, %v2327_v0 }
  0x93   : > { %1915 = vmatmul.mubr.msk.bf16.gmra.mxu0 %vm525_vm2, %v497_v33  ;;  %1947 = vmatmul.mubr.msk.bf16.gmra.mxu1 %vm525_vm2, %v2152_v34 }
  0x94   : > { %1918 = vmatprep.mubr.msk.bf16.mxu0 %vm3046_vm6, %v2327_v0  ;;  %1986 = vmatprep.mubr.msk.bf16.mxu1 %vm3046_vm6, %v2327_v0 }
  0x9b   : > { %1919 = vmatmul.mubr.msk.bf16.gmra.mxu0 %vm525_vm2, %v500_v37 }
  0x9c   : > { %1958 = vmatprep.mubr.msk.bf16.mxu0 %vm3046_vm6, %v2327_v0 }
  0xa3   : > { %1959 = vmatmul.mubr.msk.bf16.vlgmr.msra.gmra.mxu0 %vm525_vm2, %v739_v42 }
  0xa4   : > { %1962 = vmatprep.mubr.msk.bf16.mxu0 %vm3046_vm6, %v2327_v0  ;;  %2007 = vmatpush3.bf16.msra.mxu0 %v2155_v49 }
  0xa5   : > { %2008 = vmatprep.subr.bf16.mxu0 %v2327_v0 }
  0xa8   : > { %2009 = vmatpush3.bf16.msra.mxu0 %v2156_v51 }
  0xa9   : > { %2010 = vmatprep.subr.bf16.mxu0 %v2327_v0 }
  0xab   : > { %1963 = vmatmul.mubr.msk.bf16.gmra.mxu0 %vm525_vm2, %v741_v31 }
  0xac   : > { %1966 = vmatprep.mubr.msk.bf16.mxu0 %vm3046_vm6, %v2327_v0  ;;  %2011 = vmatpush3.bf16.msra.mxu0 %v2158_v53 }
  0xad   : > { %2012 = vmatprep.subr.bf16.mxu0 %v2327_v0 }
  0xb0   : > { %2013 = vmatpush3.bf16.msra.mxu0 %v2159_v55 }
  0xb3   : > { %1967 = vmatmul.mubr.msk.bf16.gmra.mxu0 %vm525_vm2, %v743_v46 }
  0xb4   : > { %1970 = vmatprep.mubr.msk.bf16.mxu0 %vm3046_vm6, %v2327_v0 }
  0xbb   : > { %1971 = vmatmul.mubr.msk.bf16.gmra.mxu0 %vm525_vm2, %v745_v48 }
  0xbc   : > { %1974 = vmatprep.mubr.msk.bf16.mxu0 %vm3046_vm6, %v2327_v0 }
  0xc3   : > { %1975 = vmatmul.mubr.msk.bf16.gmra.mxu0 %vm525_vm2, %v744_v47 }
  0xc4   : > { %2014 = vmatprep.mubr.msk.bf16.mxu0 %vm3046_vm6, %v2327_v0 }
 0x133   : > { %v685_v58 = vpop.f32.mrf.mxu1 }
 0x135   : > { %v1932_v59 = vpop.f32.mrf.mxu1 }
 0x137   : > { %v688_v60 = vpop.f32.mrf.mxu1 }
 0x139   : > { %v1933_v61 = vpop.f32.mrf.mxu1 }
 0x13b   : > { %v575_v62 = vpop.f32.mrf.mxu0  ;;  %v693_v2 = vpop.f32.mrf.mxu1 }
 0x13c   : > { %v686_v44 = vadd.f32 %v685_v58, %v575_v62 }
 0x13d   : > { %v1904_v63 = vpop.f32.mrf.mxu0  ;;  %v1936_v5 = vpop.f32.mrf.mxu1 }
 0x13f   : > { %v578_v4 = vpop.f32.mrf.mxu0  ;;  %v696_v7 = vpop.f32.mrf.mxu1 }
 0x140   : > { %v689_v47 = vadd.f32 %v688_v60, %v578_v4 }
 0x141   : > { %v1905_v6 = vpop.f32.mrf.mxu0  ;;  %v1937_v9 = vpop.f32.mrf.mxu1 }
 0x142   : > { %v901_v6 = vld [vmem:[#allocation2] sm:$0xf] }
 0x143   : > { %v583_v8 = vpop.f32.mrf.mxu0  ;;  %v701_v12 = vpop.f32.mrf.mxu1 }
 0x144   : > { %v694_v54 = vadd.f32 %v693_v2, %v583_v8 }
 0x145   : > { %v1908_v10 = vpop.f32.mrf.mxu0  ;;  %v1940_v14 = vpop.f32.mrf.mxu1 }
 0x147   : > { %v586_v13 = vpop.f32.mrf.mxu0  ;;  %v2756_v16 = vpop.f32.mrf.mxu1 }
 0x148   : > { %v697_v58 = vadd.f32 %v696_v7, %v586_v13 }
 0x149   : > { %v1909_v15 = vpop.f32.mrf.mxu0  ;;  %v1941_v18 = vpop.f32.mrf.mxu1 }
 0x14b   : > { %v591_v17 = vpop.f32.mrf.mxu0  ;;  %v2758_v20 = vpop.f32.mrf.mxu1 }
 0x14c   : > { %v702_v8 = vadd.f32 %v701_v12, %v591_v17 }
 0x14d   : > { %v1912_v19 = vpop.f32.mrf.mxu0  ;;  %v1944_v23 = vpop.f32.mrf.mxu1 }
 0x14e   : > { %v905_v19 = vld [vmem:[#allocation2 + $0x8] sm:$0x1] }
 0x14f   : > { %v2760_v22 = vpop.f32.mrf.mxu0  ;;  %v2762_v26 = vpop.f32.mrf.mxu1 }
 0x151   : > { %v1913_v25 = vpop.f32.mrf.mxu0  ;;  %v1945_v28 = vpop.f32.mrf.mxu1 }
 0x153   : > { %v2764_v27 = vpop.f32.mrf.mxu0  ;;  %v2766_v32 = vpop.f32.mrf.mxu1 }
 0x155   : > { %v1916_v29 = vpop.f32.mrf.mxu0  ;;  %v1948_v34 = vpop.f32.mrf.mxu1 }
 0x157   : > { %v2768_v33 = vpop.f32.mrf.mxu0  ;;  %v720_v36 = vpop.f32.mrf.mxu1 }
 0x159   : > { %v1917_v35 = vpop.f32.mrf.mxu0  ;;  %v1949_v38 = vpop.f32.mrf.mxu1 }
 0x15b   : > { %v2770_v37 = vpop.f32.mrf.mxu0 }
 0x15c   : > { %v718_v21 = vadd.f32 %v2766_v32, %v2770_v37  ;;  %v995_v37 = vld [vmem:[#allocation2 + $0x18] sm:$0x7] }
 0x15d   : > { %v1920_v39 = vpop.f32.mrf.mxu0 }
 0x15f   : > { %v610_v40 = vpop.f32.mrf.mxu0 }
 0x161   : > { %v1921_v42 = vpop.f32.mrf.mxu0 }
 0x162   : > { %v705_v42 = vadd.f32 %v2756_v16, %v2760_v22 }
 0x163   : > { %v819_v31 = vpop.f32.mrf.mxu0 }
 0x164   : > { %v857_v45 = vadd.f32 %v819_v31, %v686_v44  ;;  %v946_v44 = vld [vmem:[#allocation2 + $0x8] sm:$0xe] }
 0x165   : > { %v1960_v46 = vpop.f32.mrf.mxu0 }
 0x166   : > { %v866_v48 = vmax.f32 %v857_v45, 0.0 }
 0x167   : > { %v822_v49 = vpop.f32.mrf.mxu0 }
 0x168   : > { %v1808_v50 = vpack.c.bf16 %v866_v48, %v866_v48  ;;  %v858_v51 = vadd.f32 %v822_v49, %v689_v47 }
 0x169   : > { %v1961_v53 = vpop.f32.mrf.mxu0 }
 0x16a   : > { %v882_v55 = vshrl.u32 %v1808_v50, 16  ;;  %v867_v56 = vmax.f32 %v858_v51, 0.0  ;;  %v885_v61 = vshll.u32 %v1808_v50, 16 }
 0x16b   : > { %v827_v57 = vpop.f32.mrf.mxu0 }
 0x16c   : > { %v884_v59 = vrot.slane %v882_v55, 7  ;;  %v1809_v63 = vpack.c.bf16 %v867_v56, %v867_v56  ;;  %v859_v5 = vadd.f32 %v827_v57, %v694_v54  ;;  %v710_v54 = vadd.f32 %v2758_v20, %v2764_v27 }
 0x16d   : > { %v1964_v9 = vpop.f32.mrf.mxu0 }
 0x16e   : > { %v887_v62 = vor.u32 %v885_v61, %v884_v59  ;;  %v890_v10 = vshrl.u32 %v1809_v63, 16  ;;  %v868_v14 = vmax.f32 %v859_v5, 0.0  ;;  %v893_v18 = vshll.u32 %v1809_v63, 16 }
 0x16f   : > { %v830_v60 = vpop.f32.mrf.mxu0  ;;  %v888_v28 = vrot.slane %v884_v59, 4 }
 0x170   : > { %v902_v4 = vsel %vm2562_vm8, %v887_v62, %v901_v6  ;;  %v892_v15 = vrot.slane %v890_v10, 7  ;;  %v860_v2 = vadd.f32 %v830_v60, %v697_v58  ;;  %v1810_v23 = vpack.c.bf16 %v868_v14, %v868_v14  ;;  %v950_v60 = vld [vmem:[#allocation2 + $0x10] sm:$0x3] }
 0x171   : > { %903 = vst [vmem:[#allocation2] sm:$0xf] %v902_v4  ;;  %v1965_v25 = vpop.f32.mrf.mxu0  ;;  %v713_v62 = vadd.f32 %v2762_v26, %v2768_v33  ;;  %vm3050_vm8 = vcmask 517120  }
 0x172   : > { %v895_v29 = vor.u32 %v893_v18, %v892_v15  ;;  %v897_v34 = vrot.slane %v892_v15, 4  ;;  %v869_v35 = vmax.f32 %v860_v2, 0.0  ;;  %v919_v7 = vshrl.u32 %v1810_v23, 16 }
 0x173   : > { %v835_v13 = vpop.f32.mrf.mxu0  ;;  %v922_v17 = vshll.u32 %v1810_v23, 16 }
 0x174   : > { %v896_v36 = vsel %vm2540_vm15, %v888_v28, %v895_v29  ;;  %v906_v41 = vsel %vm2510_vm3, %v897_v34, %v905_v19  ;;  %v1811_v38 = vpack.c.bf16 %v869_v35, %v869_v35  ;;  %v861_v39 = vadd.f32 %v835_v13, %v702_v8  ;;  %v1035_v29 = vld [vmem:[#allocation2 + $0x18] sm:$0x8] }
 0x175   : > { %904 = vst.msk [vmem:[#allocation2 + $0x4] sm:$0xf] %vm257_vm9, %v896_v36  ;;  %907 = vst [vmem:[#allocation2 + $0x8] sm:$0x1] %v906_v41  ;;  %v921_v12 = vrot.slane %v919_v7, 7  ;;  %v1968_v40 = vpop.f32.mrf.mxu0  ;;  %vm1510_vm3 = vcmask 1041408  }
 0x176   : > { %v927_v31 = vshrl.u32 %v1811_v38, 16  ;;  %v870_v45 = vmax.f32 %v861_v39, 0.0  ;;  %v930_v49 = vshll.u32 %v1811_v38, 16 }
 0x177   : > { %v924_v46 = vor.u32 %v922_v17, %v921_v12  ;;  %v838_v47 = vpop.f32.mrf.mxu0  ;;  %v925_v55 = vrot.slane %v921_v12, 4 }
 0x178   : > { %v929_v48 = vrot.slane %v927_v31, 7  ;;  %v1812_v1 = vpack.c.bf16 %v870_v45, %v870_v45  ;;  %v862_v50 = vadd.f32 %v838_v47, %v705_v42  ;;  %v1042_v6 = vld [vmem:[#allocation2] sm:$0xf] }
 0x179   : > { %v947_v51 = vsel %vm2580_vm13, %v924_v46, %v946_v44  ;;  %v1969_v53 = vpop.f32.mrf.mxu0  ;;  %vm1524_vm13 = vcmask 523266  }
 0x17a   : > { %948 = vst [vmem:[#allocation2 + $0x8] sm:$0xe] %v947_v51  ;;  %v932_v56 = vor.u32 %v930_v49, %v929_v48  ;;  %v936_v16 = vshrl.u32 %v1812_v1, 16  ;;  %v871_v22 = vmax.f32 %v862_v50, 0.0  ;;  %v939_v63 = vshll.u32 %v1812_v1, 16 }
 0x17b   : > { %v843_v57 = vpop.f32.mrf.mxu0  ;;  %v934_v10 = vrot.slane %v929_v48, 4 }
 0x17c   : > { %v933_v59 = vsel %vm2540_vm15, %v925_v55, %v932_v56  ;;  %v938_v61 = vrot.slane %v936_v16, 7  ;;  %v863_v5 = vadd.f32 %v843_v57, %v710_v54  ;;  %v2787_v9 = vld [vmem:[#allocation2 + $0x4] sm:$0xf]  ;;  %v1814_v58 = vpack.c.bf16 %v871_v22, %v871_v22  ;;  %v2163_v55 = vld [vmem:[#allocation8 + $0x58] sm:$0xff]  }
 0x17d   : > { %949 = vst.msk [vmem:[#allocation2 + $0xc] sm:$0xf] %vm257_vm9, %v933_v59  ;;  %v1972_v20 = vpop.f32.mrf.mxu0  ;;  %v1751_v27 = vcombine.low %v1042_v6, %v2787_v9  ;;  %v2165_v6 = vld [vmem:[#allocation8 + $0x50] sm:$0xff]  }
 0x17e   : > { %v941_v14 = vor.u32 %v939_v63, %v938_v61  ;;  %v872_v4 = vmax.f32 %v863_v5, 0.0  ;;  %v972_v15 = vshrl.u32 %v1814_v58, 16  ;;  %v975_v28 = vshll.u32 %v1814_v58, 16 }
 0x17f   : > { %v846_v18 = vpop.f32.mrf.mxu0  ;;  %2015 = vmatmul.mubr.msk.bf16.vlgmr.msra.gmra.mxu0 %vm525_vm2, %v1751_v27  ;;  %v1095_v2 = vshll.u32 %v1751_v27, 16  ;;  %v970_v36 = vrot.slane %v938_v61, 4  ;;  %v1093_v45 = vshrl.u32 %v1751_v27, 16 }
 0x180   : > { %v942_v8 = vsel %vm2540_vm15, %v934_v10, %v941_v14  ;;  %v992_v19 = vsel %vm2630_vm14, %v941_v14, %v991_v52  ;;  %v1815_v23 = vpack.c.bf16 %v872_v4, %v872_v4  ;;  %v864_v25 = vadd.f32 %v846_v18, %v713_v62  ;;  %2018 = vmatprep.mubr.msk.bf16.mxu0 %vm3046_vm6, %v2327_v0  ;;  %v1039_v62 = vld [vmem:[#allocation2 + $0x20] sm:$0xf]  ;;  %v2168_v18 = vld [vmem:[#allocation8 + $0x48] sm:$0xff]  }
 0x181   : > { %v951_v26 = vsel %vm2612_vm1, %v942_v8, %v950_v60  ;;  %993 = vst [vmem:[#allocation2 + $0x10] sm:$0xc] %v992_v19  ;;  %v974_v33 = vrot.slane %v972_v15, 7  ;;  %v1973_v34 = vpop.f32.mrf.mxu0  ;;  %v1097_v39 = vrot.slane %v1095_v2, 1  ;;  %vm1559_vm1 = vcmask 1045504  }
 0x182   : > { %952 = vst [vmem:[#allocation2 + $0x10] sm:$0x3] %v951_v26  ;;  %v981_v35 = vshrl.u32 %v1815_v23, 16  ;;  %v984_v7 = vshll.u32 %v1815_v23, 16  ;;  %v873_v13 = vmax.f32 %v864_v25, 0.0  ;;  %vm1573_vm14 = vcmask 523270  }
 0x183   : > { %v977_v41 = vor.u32 %v975_v28, %v974_v33  ;;  %v851_v38 = vpop.f32.mrf.mxu0  ;;  %v979_v46 = vrot.slane %v974_v33, 4  ;;  %v1098_v1 = vor.u32 %v1097_v39, %v1093_v45 }
 0x184   : > { %v983_v12 = vrot.slane %v981_v35, 7  ;;  %v1036_v11 = vsel %vm2636_vm10, %v984_v7, %v1035_v29  ;;  %v1817_v17 = vpack.c.bf16 %v873_v13, %v873_v13  ;;  %v2806_v40 = vld [vmem:[#allocation2 + $0x8] sm:$0xff]   ;;  %v865_v44 = vadd.f32 %v851_v38, %v718_v21  ;;  %v1352_v38 = vld [vmem:[#allocation2] sm:$0xe] }
 0x185   : > { %v978_v42 = vsel %vm2540_vm15, %v970_v36, %v977_v41  ;;  %1037 = vst [vmem:[#allocation2 + $0x18] sm:$0x8] %v1036_v11  ;;  %v1976_v31 = vpop.f32.mrf.mxu0  ;;  %v1100_v48 = vshll.u32 %v2806_v40, 16  ;;  %v1750_v57 = vrot.slane %v981_v35, 11  ;;  %v1104_v10 = vshrl.u32 %v2806_v40, 16 }
 0x186   : > { %994 = vst.msk [vmem:[#allocation2 + $0x14] sm:$0xf] %vm257_vm9, %v978_v42  ;;  %v986_v32 = vor.u32 %v984_v7, %v983_v12  ;;  %v1016_v47 = vshrl.u32 %v1817_v17, 16  ;;  %v874_v30 = vmax.f32 %v865_v44, 0.0  ;;  %v1019_v53 = vshll.u32 %v1817_v17, 16 }
 0x187   : > { %v854_v49 = vpop.f32.mrf.mxu0  ;;  %2019 = vmatmul.mubr.msk.bf16.gmra.mxu0 %vm525_vm2, %v2806_v40  ;;  %v1102_v54 = vrot.slane %v1100_v48, 1  ;;  %v1775_v39 = vcombine.low %v1352_v38, %v2787_v9  ;;  %v1366_v12 = vrot.slane %v2806_v40, 1  ;;  %vm1549_vm10 = vcmask 523268  }
 0x188   : > { %v987_v50 = vsel %vm2540_vm15, %v979_v46, %v986_v32  ;;  %v1018_v51 = vrot.slane %v1016_v47, 7  ;;  %2022 = vmatprep.mubr.msk.bf16.mxu0 %vm3046_vm6, %v2327_v0  ;;  %v1818_v16 = vpack.c.bf16 %v874_v30, %v874_v30 }
 0x189   : > { %v996_v56 = vsel %vm2651_vm4, %v987_v50, %v995_v37  ;;  %v1977_v22 = vpop.f32.mrf.mxu0  ;;  %v1103_v61 = vsel %vm461_vm12, %v1098_v1, %v1102_v54  ;;  %v1106_v4 = vor.u32 %v1104_v10, %v1102_v54  ;;  %v1365_v11 = vrot.slane %v1775_v39, 1 }
 0x18a   : > { %997 = vst [vmem:[#allocation2 + $0x18] sm:$0x7] %v996_v56  ;;  %v1021_v59 = vor.u32 %v1019_v53, %v1018_v51  ;;  %v1025_v63 = vshrl.u32 %v1818_v16, 16  ;;  %1987 = vmatmul.mubr.msk.bf16.vlgmr.msra.gmra.mxu1 %vm525_vm2, %v1103_v61  ;;  %v1028_v52 = vshll.u32 %v1818_v16, 16  ;;  %v1023_v20 = vrot.slane %v1018_v51, 4 }
 0x18b   : > { %2035 = vmatpush3.bf16.msra.mxu1 %v2163_v55  ;;  %1990 = vmatprep.mubr.msk.bf16.mxu1 %vm3046_vm6, %v2327_v0  ;;  %v1367_v17 = vsel %vm736_vm5, %v1365_v11, %v1366_v12  ;;  %vm1576_vm4 = vcmask 521216  }
 0x18c   : > { %v1022_v5 = vsel %vm2540_vm15, %v1750_v57, %v1021_v59  ;;  %v1027_v43 = vrot.slane %v1025_v63, 7  ;;  %2036 = vmatprep.subr.bf16.mxu1 %v2327_v0 }
 0x18d   : > { %1038 = vst.msk [vmem:[#allocation2 + $0x1c] sm:$0xf] %vm257_vm9, %v1022_v5  ;;  %v2164_v58 = vld [vmem:[#allocation2 + $0x10] sm:$0xff]  }
 0x18e   : > { %v1030_v27 = vor.u32 %v1028_v52, %v1027_v43  ;;  %v1108_v14 = vshll.u32 %v2164_v58, 16  ;;  %v1112_v23 = vshrl.u32 %v2164_v58, 16  ;;  %v1368_v42 = vrot.slane %v2164_v58, 1 }
 0x18f   : > { %2023 = vmatmul.mubr.msk.bf16.gmra.mxu0 %vm525_vm2, %v2164_v58  ;;  %2037 = vmatpush3.bf16.msra.mxu1 %v2165_v6 }
 0x190   : > { %2026 = vmatprep.mubr.msk.bf16.mxu0 %vm3046_vm6, %v2327_v0  ;;  %v1031_v60 = vsel %vm2540_vm15, %v1023_v20, %v1030_v27  ;;  %v1110_v15 = vrot.slane %v1108_v14, 1  ;;  %2038 = vmatprep.subr.bf16.mxu1 %v2327_v0  ;;  %v1369_v44 = vsel %vm736_vm5, %v1366_v12, %v1368_v42  ;;  %vm1535_vm15 = vcmask 1043456  }
 0x191   : > { %v1040_v2 = vsel %vm2679_vm7, %v1031_v60, %v1039_v62 }
 0x192   : > { %1041 = vst [vmem:[#allocation2 + $0x20] sm:$0xf] %v1040_v2  ;;  %v1111_v8 = vsel %vm461_vm12, %v1106_v4, %v1110_v15  ;;  %v1114_v26 = vor.u32 %v1112_v23, %v1110_v15  ;;  %v1822_v23 = vld [vmem:[%s2492_s9] sm:$0xff]  }
 0x193   : > { %1991 = vmatmul.mubr.msk.bf16.gmra.mxu1 %vm525_vm2, %v1111_v8 }
 0x194   : > { %v2166_v19 = vld [vmem:[#allocation2 + $0x18] sm:$0xff]   ;;  %1994 = vmatprep.mubr.msk.bf16.mxu1 %vm3046_vm6, %v2327_v0  ;;  %2039 = vmatpush3.bf16.msra.mxu1 %v2168_v18 }
 0x195   : > { %v1116_v25 = vshll.u32 %v2166_v19, 16  ;;  %2040 = vmatprep.subr.bf16.mxu1 %v2327_v0  ;;  %v1120_v35 = vshrl.u32 %v2166_v19, 16  ;;  %v1370_v31 = vrot.slane %v2166_v19, 1 }
 0x197   : > { %2027 = vmatmul.mubr.msk.bf16.gmra.mxu0 %vm525_vm2, %v2166_v19  ;;  %v1118_v3 = vrot.slane %v1116_v25, 1  ;;  %v1371_v9 = vsel %vm736_vm5, %v1368_v42, %v1370_v31 }
 0x198   : > { %2030 = vmatprep.mubr.msk.bf16.mxu0 %vm3046_vm6, %v2327_v0  ;;  %2041 = vmatpush3.bf16.msra.mxu1 %v2170_v24 }
 0x199   : > { %v1119_v33 = vsel %vm461_vm12, %v1114_v26, %v1118_v3  ;;  %v2169_v28 = vld [vmem:[#allocation2 + $0x20] ss:$0 sps:$4 sm:$0xff]   ;;  %v1122_v13 = vor.u32 %v1120_v35, %v1118_v3  ;;  %v1823_v3 = vunpack.c.l.bf16 %v1822_v23 }
 0x19a   : > { %v2167_v29 = vld [vmem:[#allocation2 + $0x20] ss:$0 sps:$4 sm:$0x77]   ;;  %v1124_v34 = vshll.u32 %v2169_v28, 16  ;;  %v1128_v36 = vshrl.u32 %v2169_v28, 16  ;;  %v1372_v40 = vrot.slane %v2169_v28, 1 }
 0x19b   : > { %1995 = vmatmul.mubr.msk.bf16.gmra.mxu1 %vm525_vm2, %v1119_v33  ;;  %v1837_v28 = vld [vmem:[%s2492_s9 + $0x8] sm:$0xff]  }
 0x19c   : > { %1998 = vmatprep.mubr.msk.bf16.mxu1 %vm3046_vm6, %v2327_v0  ;;  %v1126_v7 = vrot.slane %v1124_v34, 1  ;;  %v1373_v45 = vsel %vm736_vm5, %v1370_v31, %v1372_v40 }
 0x19e   : > { %v1127_v21 = vsel %vm461_vm12, %v1122_v13, %v1126_v7  ;;  %v1130_v41 = vor.u32 %v1128_v36, %v1126_v7  ;;  %v1824_v13 = vunpack.c.h.bf16 %v1822_v23 }
 0x19f   : > { %2031 = vmatmul.mubr.msk.bf16.gmra.mxu0 %vm525_vm2, %v2167_v29 }
 0x1a3   : > { %1999 = vmatmul.mubr.msk.bf16.gmra.mxu1 %vm525_vm2, %v1127_v21  ;;  %v1827_v21 = vunpack.c.l.bf16 %v1837_v28 }
 0x1a4   : > { %2002 = vmatprep.mubr.msk.bf16.mxu1 %vm3046_vm6, %v2327_v0 }
 0x1a5   : > { %v1511_v42 = vrot.slane %v1827_v21, 6 }
 0x1ab   : > { %2003 = vmatmul.mubr.msk.bf16.gmra.mxu1 %vm525_vm2, %v1130_v41  ;;  %v1828_v41 = vunpack.c.h.bf16 %v1837_v28 }
 0x1ac   : > { %2042 = vmatprep.mubr.msk.bf16.mxu1 %vm3046_vm6, %v2327_v0 }
 0x1ad   : > { %v1512_v31 = vrot.slane %v1828_v41, 6 }
 0x1b3   : > { %2043 = vmatmul.mubr.msk.bf16.vlgmr.msra.gmra.mxu1 %vm525_vm2, %v1367_v17 }
 0x1b4   : > { %2046 = vmatprep.mubr.msk.bf16.mxu1 %vm3046_vm6, %v2327_v0 }
 0x1bb   : > { %2047 = vmatmul.mubr.msk.bf16.gmra.mxu1 %vm525_vm2, %v1369_v44 }
 0x1bc   : > { %2050 = vmatprep.mubr.msk.bf16.mxu1 %vm3046_vm6, %v2327_v0 }
 0x1c3   : > { %2051 = vmatmul.mubr.msk.bf16.gmra.mxu1 %vm525_vm2, %v1371_v9  ;;  %v1838_v9 = vld [vmem:[%s2492_s9 + $0x10] sm:$0xff]  }
 0x1c4   : > { %2054 = vmatprep.mubr.msk.bf16.mxu1 %vm3046_vm6, %v2327_v0 }
 0x1cb   : > { %2055 = vmatmul.mubr.msk.bf16.gmra.mxu1 %vm525_vm2, %v1373_v45 }
 0x1cc   : > { %2058 = vmatprep.mubr.msk.bf16.mxu1 %vm3046_vm6, %v2327_v0 }
 0x1d3   : > { %2059 = vmatmul.mubr.msk.bf16.gmra.mxu1 %vm525_vm2, %v1372_v40 }
 0x23f   : > { %v1314_v46 = vpop.f32.mrf.mxu0 }
 0x241   : > { %v2016_v32 = vpop.f32.mrf.mxu0 }
 0x243   : > { %v1317_v37 = vpop.f32.mrf.mxu0 }
 0x245   : > { %v2017_v47 = vpop.f32.mrf.mxu0 }
 0x246   : > { %v1831_v47 = vunpack.c.l.bf16 %v1838_v9 }
 0x247   : > { %v1322_v48 = vpop.f32.mrf.mxu0 }
 0x249   : > { %v2020_v30 = vpop.f32.mrf.mxu0 }
 0x24a   : > { %v1204_v1 = vpop.f32.mrf.mxu1  ;;  %v1513_v30 = vsel %vm1510_vm3, %v1511_v42, %v1512_v31 }
 0x24b   : > { %v2876_v49 = vpop.f32.mrf.mxu0  ;;  %v1315_v26 = vadd.f32 %v1314_v46, %v1204_v1  ;;  %v1832_v1 = vunpack.c.h.bf16 %v1838_v9 }
 0x24c   : > { %v1988_v51 = vpop.f32.mrf.mxu1 }
 0x24d   : > { %v2021_v50 = vpop.f32.mrf.mxu0 }
 0x24e   : > { %v1207_v54 = vpop.f32.mrf.mxu1 }
 0x24f   : > { %v2878_v53 = vpop.f32.mrf.mxu0  ;;  %v1318_v35 = vadd.f32 %v1317_v37, %v1207_v54 }
 0x250   : > { %v1989_v56 = vpop.f32.mrf.mxu1 }
 0x251   : > { %v2024_v55 = vpop.f32.mrf.mxu0 }
 0x253   : > { %v2880_v16 = vpop.f32.mrf.mxu0  ;;  %v1212_v0 = vpop.f32.mrf.mxu1 }
 0x254   : > { %v1323_v11 = vadd.f32 %v1322_v48, %v1212_v0  ;;  %v1536_v0 = vrot.slane %v1831_v47, 4 }
 0x255   : > { %v2025_v22 = vpop.f32.mrf.mxu0  ;;  %v1992_v57 = vpop.f32.mrf.mxu1 }
 0x256   : > { %v1839_v57 = vld [vmem:[%s2492_s9 + $0x18] sm:$0xff]  }
 0x257   : > { %v2882_v59 = vpop.f32.mrf.mxu0  ;;  %v1215_v61 = vpop.f32.mrf.mxu1 }
 0x258   : > { %v1326_v32 = vadd.f32 %v2876_v49, %v1215_v61  ;;  %v1537_v49 = vrot.slane %v1832_v1, 4 }
 0x259   : > { %v2028_v63 = vpop.f32.mrf.mxu0  ;;  %v1993_v5 = vpop.f32.mrf.mxu1 }
 0x25b   : > { %v2884_v6 = vpop.f32.mrf.mxu0  ;;  %v1220_v43 = vpop.f32.mrf.mxu1 }
 0x25c   : > { %v1331_v55 = vadd.f32 %v2878_v53, %v1220_v43  ;;  %v1835_v53 = vunpack.c.l.bf16 %v1839_v57 }
 0x25d   : > { %v2029_v52 = vpop.f32.mrf.mxu0  ;;  %v1996_v58 = vpop.f32.mrf.mxu1 }
 0x25f   : > { %v2886_v20 = vpop.f32.mrf.mxu0  ;;  %v2888_v27 = vpop.f32.mrf.mxu1 }
 0x260   : > { %v1334_v52 = vadd.f32 %v2880_v16, %v2888_v27  ;;  %v1560_v27 = vrot.slane %v1835_v53, 2 }
 0x261   : > { %v2032_v62 = vpop.f32.mrf.mxu0  ;;  %v1997_v10 = vpop.f32.mrf.mxu1 }
 0x262   : > { %v1538_v10 = vsel %vm1535_vm15, %v1536_v0, %v1537_v49 }
 0x263   : > { %v1349_v14 = vpop.f32.mrf.mxu0  ;;  %v2890_v60 = vpop.f32.mrf.mxu1 }
 0x264   : > { %v1836_v14 = vunpack.c.h.bf16 %v1839_v57 }
 0x265   : > { %v2033_v4 = vpop.f32.mrf.mxu0  ;;  %v2000_v15 = vpop.f32.mrf.mxu1 }
 0x267   : > { %v2892_v18 = vpop.f32.mrf.mxu1 }
 0x268   : > { %v1342_v28 = vadd.f32 %v2884_v6, %v2892_v18 }
 0x269   : > { %v2001_v2 = vpop.f32.mrf.mxu1 }
 0x26b   : > { %v2894_v8 = vpop.f32.mrf.mxu1 }
 0x26d   : > { %v2004_v19 = vpop.f32.mrf.mxu1 }
 0x26f   : > { %v1239_v24 = vpop.f32.mrf.mxu1 }
 0x270   : > { %v1339_v24 = vadd.f32 %v2882_v59, %v2890_v60 }
 0x271   : > { %v2005_v25 = vpop.f32.mrf.mxu1 }
 0x272   : > { %v1561_v25 = vrot.slane %v1836_v14, 2 }
 0x273   : > { %v1447_v33 = vpop.f32.mrf.mxu1 }
 0x274   : > { %v1485_v29 = vadd.f32 %v1447_v33, %v1315_v26 }
 0x275   : > { %v2044_v34 = vpop.f32.mrf.mxu1 }
 0x276   : > { %v1498_v7 = vadd.f32 %v1823_v3, %v1485_v29  ;;  %v1562_v34 = vsel %vm1559_vm1, %v1560_v27, %v1561_v25 }
 0x277   : > { %v1450_v36 = vpop.f32.mrf.mxu1 }
 0x278   : > { %v1500_v38 = vmax.f32 %v1498_v7, 0.0  ;;  %v1486_v39 = vadd.f32 %v1450_v36, %v1318_v35  ;;  %v1347_v36 = vadd.f32 %v2886_v20, %v2894_v8 }
 0x279   : > { %v2045_v12 = vpop.f32.mrf.mxu1 }
 0x27a   : > { %1502 = vst.msk [vmem:[%s2899_s20] sm:$0xff] %vm525_vm2, %v1500_v38  ;;  %v1499_v17 = vadd.f32 %v1824_v13, %v1486_v39 }
 0x27b   : > { %v1455_v44 = vpop.f32.mrf.mxu1 }
 0x27c   : > { %v1501_v40 = vmax.f32 %v1499_v17, 0.0  ;;  %v1487_v45 = vadd.f32 %v1455_v44, %v1323_v11 }
 0x27d   : > { %v2048_v46 = vpop.f32.mrf.mxu1 }
 0x27e   : > { %1503 = vst.msk [vmem:[%s2899_s20 + $0x8] sm:$0xff] %vm525_vm2, %v1501_v40  ;;  %v1517_v37 = vadd.f32 %v1511_v42, %v1487_v45 }
 0x27f   : > { %v1458_v48 = vpop.f32.mrf.mxu1 }
 0x280   : > { %v1520_v50 = vmax.f32 %v1517_v37, 0.0  ;;  %v1488_v51 = vadd.f32 %v1458_v48, %v1326_v32 }
 0x281   : > { %v2049_v54 = vpop.f32.mrf.mxu1 }
 0x282   : > { %1787 = vst.msk [vmem:[%s2899_s20 + $0xe] sm:$0xfc] %vm1524_vm13, %v1520_v50  ;;  %v1518_v56 = vadd.f32 %v1513_v30, %v1488_v51 }
 0x283   : > { %v1463_v22 = vpop.f32.mrf.mxu1 }
 0x284   : > { %v1521_v61 = vmax.f32 %v1518_v56, 0.0  ;;  %v1489_v63 = vadd.f32 %v1463_v22, %v1331_v55 }
 0x285   : > { %v2052_v5 = vpop.f32.mrf.mxu1 }
 0x286   : > { %1788 = vst.msk [vmem:[%s2899_s20 + $0x16] sm:$0xff] %vm525_vm2, %v1521_v61  ;;  %v1519_v58 = vadd.f32 %v1512_v31, %v1489_v63  ;;  %v1542_v62 = vadd.f32 %v1536_v0, %v1489_v63 }
 0x287   : > { %v1466_v43 = vpop.f32.mrf.mxu1 }
 0x288   : > { %v1522_v4 = vmax.f32 %v1519_v58, 0.0  ;;  %v1545_v15 = vmax.f32 %v1542_v62, 0.0  ;;  %v1490_v2 = vadd.f32 %v1466_v43, %v1334_v52 }
 0x289   : > { %v2053_v19 = vpop.f32.mrf.mxu1 }
 0x28a   : > { %1789 = vst.msk [vmem:[%s2899_s20 + $0x1e] sm:$0x3] %vm3050_vm8, %v1522_v4  ;;  %v1543_v16 = vadd.f32 %v1538_v10, %v1490_v2 }
 0x28b   : > { %1792 = vst.msk [vmem:[%s2899_s20 + $0x1c] sm:$0xf0] %vm1549_vm10, %v1545_v15  ;;  %v1471_v23 = vpop.f32.mrf.mxu1 }
 0x28c   : > { %v1546_v26 = vmax.f32 %v1543_v16, 0.0  ;;  %v1491_v3 = vadd.f32 %v1471_v23, %v1339_v24 }
 0x28d   : > { %v2056_v33 = vpop.f32.mrf.mxu1 }
 0x28e   : > { %1793 = vst.msk [vmem:[%s2899_s20 + $0x24] sm:$0xff] %vm525_vm2, %v1546_v26  ;;  %v1544_v29 = vadd.f32 %v1537_v49, %v1491_v3  ;;  %v1566_v59 = vadd.f32 %v1560_v27, %v1491_v3 }
 0x28f   : > { %v1474_v60 = vpop.f32.mrf.mxu1 }
 0x290   : > { %v1547_v35 = vmax.f32 %v1544_v29, 0.0  ;;  %v1569_v7 = vmax.f32 %v1566_v59, 0.0  ;;  %v1492_v13 = vadd.f32 %v1474_v60, %v1342_v28 }
 0x291   : > { %v2057_v21 = vpop.f32.mrf.mxu1 }
 0x292   : > { %1794 = vst.msk [vmem:[%s2899_s20 + $0x2c] sm:$0xf] %vm257_vm9, %v1547_v35  ;;  %v1567_v6 = vadd.f32 %v1562_v34, %v1492_v13 }
 0x293   : > { %1797 = vst.msk [vmem:[%s2899_s20 + $0x2a] sm:$0xc0] %vm1573_vm14, %v1569_v7  ;;  %v1479_v18 = vpop.f32.mrf.mxu1 }
 0x294   : > { %v1570_v41 = vmax.f32 %v1567_v6, 0.0  ;;  %v1493_v38 = vadd.f32 %v1479_v18, %v1347_v36 }
 0x295   : > { %v2060_v39 = vpop.f32.mrf.mxu1 }
 0x296   : > { %1798 = vst.msk [vmem:[%s2899_s20 + $0x32] sm:$0xff] %vm525_vm2, %v1570_v41  ;;  %v1568_v12 = vadd.f32 %v1561_v25, %v1493_v38 }
 0x297   : > { %v1482_v11 = vpop.f32.mrf.mxu1 }
 0x298   : > { %v1571_v20 = vmax.f32 %v1568_v12, 0.0 }
 0x299   : > { %v2061_v8 = vpop.f32.mrf.mxu1 }
 0x29a   : > { %1799 = vst.msk [vmem:[%s2899_s20 + $0x3a] sm:$0x3f] %vm1576_vm4, %v1571_v20 }
 0x29b   : > { %2265 = shalt.err (!%p2262_p3)
}
 0x29c   : > { %s2266_s23 = scalar_lea.hbm %s2935_s30, 1024  ;;  %s2270_s6 = scalar_lea.hbm %s2984_s3, 2048 }
 0x29d   : > { %p2267_p11 = scmp.ne.s32.totalorder %s2935_s30, %s2266_s23  ;;  %p2271_p4 = scmp.lt.s32.totalorder %s2935_s30, %s2984_s3 }
 0x29e   : > { %p2272_p6 = scmp.lt.s32.totalorder %s2270_s6, %s2266_s23 }
 0x29f   : > { %p2268_p9 = pnand %p2267_p11, %p3051_p2 }
 0x2a0   : > { %p2273_p8 = por %p2272_p6, %p2271_p4 }
 0x2a1   : > { %p2269_p1 = pneg %p2268_p9 }
 0x2a3   : > { %p2274_p5 = pnand %p2273_p8, %p2269_p1 }
 0x2a5   : > { %2277 = shalt.err (!%p2274_p5)
}
 0x2a6   : > { %s2330_s18 = smov 128   ;;  %s2331_s20 = smov 8  }
 0x2a7   : > { %2072 = dma.vmem_to_hbm [thread:$0]  (%p3051_p2), %s2937_s28, 1024, %s2935_s30, %s1579_s16, %s2330_s18, %s2330_s18, %s2331_s20  }
 0x2a8 PF: > { %s1608_s27 = sand.u32 1, %s2308_s12   ;;  %p3052_p7 = scmp.ne.s32.totalorder %s2994_s19, 0 }
 0x2a9   : > { %p3053_p12 = scmp.ge.s32.totalorder %s2320_s15, 2  ;;  %s1609_s25 = scalar_lea.sflag [#allocation5], %s1608_s27 }
 0x2ab   : > { %p2086_p13 = pnand %p3053_p12, %p3052_p7 }
 0x2ad   : > { %p2087_p0 = pneg %p2086_p13 }
 0x2af   : > { %2303 = dma.done.wait (%p2087_p0), %s1609_s25, 1024  }
 0x2b0   : > { %2305 = vsyncadd (%p2087_p0), %s1609_s25, 4294966272  ;;  %p17_p10 = scmp.ge.s32.totalorder %s2430_s7, 4   ;;  %s3054_s12 = smov %s2312_s13 }
 0x2b1   : > { %s3055_s13 = smov %s2316_s14  ;;  %s3056_s14 = smov %s2446_s11 }
 0x2b2   : > { %s3057_s15 = smov %s2430_s7  ;;  %19 = sbr.rel (!%p17_p10) target bundleno = 6 (0x6), region = 95 }
 0x2b7   :  { %1614 = vsyncpa [#allocation4], 1 }
 0x2b8   :  { %1616 = vsyncpa [#allocation4 + $0x1], 1 }
 0x2b9   :  { %1617 = vsyncpa [#allocation7], 1 }
 0x2ba   :  { %1618 = vsyncpa [#allocation5], 1 }
 0x2bb   :  { %1620 = vsyncpa [#allocation5 + $0x1], 1 }

</bundles_post_ra>
